<compile_context>
chip_gen: v5e
topology: v5e:2x2
jax: 0.10.0
libtpu: 0.0.40
codegen_flags: <defaults>
</compile_context>

<pallas_src>
import functools

import jax
import jax.numpy as jnp
from jax import lax
from jax.experimental import pallas as pl
from jax.experimental.pallas import tpu as pltpu


def _round_up(x, m):
    return ((x + m - 1) // m) * m


# ---------------------------------------------------------------------------
# Fused kernel: batched input projection + T-step GRU recurrence, one call.
# ---------------------------------------------------------------------------
def _gru_encoder_fused_kernel(x_ref,       # (Tp, H)  bf16 : gathered embeddings (rows >= T are zero pad)
                              h0_ref,      # (1, H)   f32  : initial hidden
                              wih_t_ref,   # (H, 3H)  bf16 : W_ih^T
                              whh_t_ref,   # (H, 3H)  bf16 : W_hh^T
                              brz_ref,     # (1, 3H)  f32  : b_ih (+ b_hh folded into r,z columns)
                              bhn_ref,     # (1, H)   f32  : b_hh for the n gate (scaled by r -> kept separate)
                              out_ref,     # (Tp, H)  f32  : per-step hidden states (== GRU outputs)
                              hfin_ref,    # (1, H)   f32  : final hidden state
                              gi_scratch,  # (Tp, 3H) f32  : precomputed input projections
                              *, nsteps):
    H = h0_ref.shape[-1]

    # ---- Hoisted, token-parallel input projection: one real MXU matmul. ----
    gi_scratch[...] = (
        jnp.dot(x_ref[...], wih_t_ref[...], preferred_element_type=jnp.float32)
        + brz_ref[...]
    )

    # Zero the (small) output slab so padded rows are defined.
    out_ref[...] = jnp.zeros_like(out_ref)

    bhn = bhn_ref[...]                                       # (1, H) f32

    def step(t, h):                                          # h: (1, H) f32
        gi_t = gi_scratch[pl.ds(t, 1), :]                    # (1, 3H) f32
        gh = jnp.dot(h.astype(whh_t_ref.dtype), whh_t_ref[...],
                     preferred_element_type=jnp.float32)     # (1, 3H) f32, no bias
        # PyTorch nn.GRU cell, gate order (r, z, n); all elementwise math in f32.
        r = jax.nn.sigmoid(gi_t[:, 0:H] + gh[:, 0:H])
        z = jax.nn.sigmoid(gi_t[:, H:2 * H] + gh[:, H:2 * H])
        n = jnp.tanh(gi_t[:, 2 * H:3 * H] + r * (gh[:, 2 * H:3 * H] + bhn))
        h_new = (1.0 - z) * n + z * h
        out_ref[pl.ds(t, 1), :] = h_new
        return h_new

    h_final = lax.fori_loop(0, nsteps, step, h0_ref[...],
                            unroll=(nsteps <= 16))
    hfin_ref[...] = h_final


# ---------------------------------------------------------------------------
# Wrappers
# ---------------------------------------------------------------------------
def encoder_run_sequence(tokens, hidden0, params):
    """Run the encoder over a whole token sequence in ONE pallas_call.

    tokens : (T,) int32 ; hidden0 : (1, 1, H) f32
    Returns (outputs (T, 1, H) f32, final hidden (1, 1, H) f32).
    """
    emb = params["embedding"]                       # (V, H) bf16
    V, H = emb.shape
    T = int(tokens.shape[0])
    T_pad = max(8, _round_up(T, 8))                 # >= 8 sublanes for the batched matmul

    tok = jnp.asarray(tokens, jnp.int32).reshape((T,))
    x = jnp.take(emb, tok, axis=0)                  # (T, H) bf16 — single contiguous gather
    x = jnp.pad(x, ((0, T_pad - T), (0, 0)))        # zero rows; never read by the recurrence
    h0 = hidden0.reshape(1, H).astype(jnp.float32)

    kernel = functools.partial(_gru_encoder_fused_kernel, nsteps=T)

    outputs_slab, h_final = pl.pallas_call(
        kernel,
        grid=(1,),
        in_specs=[
            pl.BlockSpec((T_pad, H), lambda i: (0, 0)),       # embedded tokens
            pl.BlockSpec((1, H), lambda i: (0, 0)),           # h0
            pl.BlockSpec((H, 3 * H), lambda i: (0, 0)),       # W_ih^T
            pl.BlockSpec((H, 3 * H), lambda i: (0, 0)),       # W_hh^T
            pl.BlockSpec((1, 3 * H), lambda i: (0, 0)),       # folded r/z/n input bias
            pl.BlockSpec((1, H), lambda i: (0, 0)),           # b_hh (n gate)
        ],
        out_specs=(
            pl.BlockSpec((T_pad, H), lambda i: (0, 0)),       # per-step hiddens (lane-dense slab)
            pl.BlockSpec((1, H), lambda i: (0, 0)),           # final hidden
        ),
        out_shape=(
            jax.ShapeDtypeStruct((T_pad, H), jnp.float32),
            jax.ShapeDtypeStruct((1, H), jnp.float32),
        ),
        scratch_shapes=[pltpu.VMEM((T_pad, 3 * H), jnp.float32)],
        compiler_params=pltpu.CompilerParams(
            # single serial invocation; the recurrence lives inside the kernel
            dimension_semantics=("arbitrary",)),
    )(x, h0, params["w_ih_t"], params["w_hh_t"], params["b_rz"], params["b_hn"])

    outputs = outputs_slab[:T].reshape(T, 1, H)
    return outputs, h_final.reshape(1, 1, H)


def encoder_forward(token, hidden, params):
    """Single-token step matching PyTorch Encoder.forward(input, hidden).

    Returns (hidden, output), both (1, 1, H) — identical for a 1-layer GRU step.
    """
    H = params["embedding"].shape[-1]
    tok = jnp.asarray(token, jnp.int32).reshape((1,))
    outputs, h_final = encoder_run_sequence(tok, hidden, params)
    return h_final, outputs.reshape(1, 1, H)


# ---------------------------------------------------------------------------
# Parameters (kernel-ready layout: pre-transposed bf16 weights, folded biases)
# ---------------------------------------------------------------------------
def make_params(key, vocab_size, hidden_dim):
    k_emb, k_wih, k_whh, k_bih, k_bhh = jax.random.split(key, 5)
    bound = 1.0 / jnp.sqrt(hidden_dim)
    emb = jax.random.normal(k_emb, (vocab_size, hidden_dim), jnp.float32)
    w_ih = jax.random.uniform(k_wih, (3 * hidden_dim, hidden_dim), jnp.float32,
                              -bound, bound)
    w_hh = jax.random.uniform(k_whh, (3 * hidden_dim, hidden_dim), jnp.float32,
                              -bound, bound)
    b_ih = jax.random.uniform(k_bih, (3 * hidden_dim,), jnp.float32, -bound, bound)
    b_hh = jax.random.uniform(k_bhh, (3 * hidden_dim,), jnp.float32, -bound, bound)

    H = hidden_dim
    # Fold b_hh into b_ih for the r and z gates only (n-gate b_hh is scaled by r
    # inside the cell, so it MUST stay separate).
    b_rz = b_ih.at[0:2 * H].add(b_hh[0:2 * H]).reshape(1, 3 * H)
    b_hn = b_hh[2 * H:3 * H].reshape(1, H)

    return {
        "embedding": emb.astype(jnp.bfloat16),           # (V, H) bf16
        "w_ih_t": w_ih.T.astype(jnp.bfloat16),           # (H, 3H), transposed once
        "w_hh_t": w_hh.T.astype(jnp.bfloat16),           # (H, 3H), transposed once
        "b_rz": b_rz,                                    # (1, 3H) f32, folded
        "b_hn": b_hn,                                    # (1, H)  f32
    }


# ---------------------------------------------------------------------------
# Pure-JAX reference (same precision policy: bf16 matmul operands, f32 math)
# ---------------------------------------------------------------------------
def encoder_run_sequence_ref(tokens, hidden0, params):
    H = params["embedding"].shape[-1]
    h = hidden0.reshape(1, H).astype(jnp.float32)
    outs = []
    for t in range(int(tokens.shape[0])):
        x = params["embedding"][tokens[t]].reshape(1, H)           # (1, H) bf16
        gi = jnp.dot(x, params["w_ih_t"],
                     preferred_element_type=jnp.float32) + params["b_rz"]
        gh = jnp.dot(h.astype(jnp.bfloat16), params["w_hh_t"],
                     preferred_element_type=jnp.float32)
        r = jax.nn.sigmoid(gi[:, 0:H] + gh[:, 0:H])
        z = jax.nn.sigmoid(gi[:, H:2 * H] + gh[:, H:2 * H])
        n = jnp.tanh(gi[:, 2 * H:3 * H] + r * (gh[:, 2 * H:3 * H] + params["b_hn"]))
        h = (1.0 - z) * n + z * h
        outs.append(h)
    return jnp.stack(outs, 0).reshape(-1, 1, H), h.reshape(1, 1, H)


# ---------------------------------------------------------------------------
if __name__ == "__main__":
    VOCAB = 64        # stand-in for input_lang.n_words
    HIDDEN = 128      # stand-in for hidden_dim=512 (small, lane-aligned)
    SEQ = 8           # encoder loop length for the demo

    key = jax.random.PRNGKey(0)
    k_params, k_tok = jax.random.split(key)
    params = make_params(k_params, VOCAB, HIDDEN)

    tokens = jax.random.randint(k_tok, (SEQ,), 0, VOCAB, dtype=jnp.int32)
    hidden0 = jnp.zeros((1, 1, HIDDEN), jnp.float32)     # Encoder.initHidden()

    # Full-sequence pass: one fused pallas_call (batched gi + in-kernel recurrence).
    outputs, h_final = encoder_run_sequence(tokens, hidden0, params)
    jax.block_until_ready((outputs, h_final))

    outputs_ref, h_final_ref = encoder_run_sequence_ref(tokens, hidden0, params)
    assert outputs.shape == (SEQ, 1, HIDDEN) and h_final.shape == (1, 1, HIDDEN)
    assert jnp.allclose(outputs, outputs_ref, atol=2e-3, rtol=2e-3), \
        "sequence outputs mismatch vs reference"
    assert jnp.allclose(h_final, h_final_ref, atol=2e-3, rtol=2e-3), \
        "final hidden mismatch vs reference"

    # Single-token call matching PyTorch Encoder.forward -> (hidden, output).
    h1, out1 = encoder_forward(tokens[0], hidden0, params)
    jax.block_until_ready((h1, out1))
    assert h1.shape == (1, 1, HIDDEN) and out1.shape == (1, 1, HIDDEN)
    assert jnp.allclose(h1, outputs_ref[0].reshape(1, 1, HIDDEN), atol=2e-3, rtol=2e-3)
    assert jnp.array_equal(h1, out1)   # 1-layer, seq=1 GRU: output == hidden

    # TODO(synk): nn.Dropout is declared but never applied in forward(); no-op here.
    print("KERNEL_OK")
</pallas_src>

<mosaic_0001>
module attributes {stable_mosaic.version = 11 : i64} {
  func.func @_gru_encoder_fused_kernel(%arg0: i32, %arg1: memref<8x128xbf16, #tpu.memory_space<vmem>>, %arg2: memref<1x128xf32, #tpu.memory_space<vmem>>, %arg3: memref<128x384xbf16, #tpu.memory_space<vmem>>, %arg4: memref<128x384xbf16, #tpu.memory_space<vmem>>, %arg5: memref<1x384xf32, #tpu.memory_space<vmem>>, %arg6: memref<1x128xf32, #tpu.memory_space<vmem>>, %arg7: memref<8x128xf32, #tpu.memory_space<vmem>>, %arg8: memref<1x128xf32, #tpu.memory_space<vmem>>, %arg9: memref<8x384xf32, #tpu.memory_space<vmem>>) attributes {dimension_semantics = [#tpu.dimension_semantics<arbitrary>], iteration_bounds = array<i64: 1>, scalar_prefetch = 0 : i64, scratch_operands = 1 : i64, tpu.core_type = #tpu.core_type<tc>, window_params = [{pipeline_mode = #tpu.pipeline_mode<synchronous>, transform_indices = @transform_0, window_bounds = array<i64: 8, 128>}, {pipeline_mode = #tpu.pipeline_mode<synchronous>, transform_indices = @transform_1, window_bounds = array<i64: 1, 128>}, {pipeline_mode = #tpu.pipeline_mode<synchronous>, transform_indices = @transform_2, window_bounds = array<i64: 128, 384>}, {pipeline_mode = #tpu.pipeline_mode<synchronous>, transform_indices = @transform_3, window_bounds = array<i64: 128, 384>}, {pipeline_mode = #tpu.pipeline_mode<synchronous>, transform_indices = @transform_4, window_bounds = array<i64: 1, 384>}, {pipeline_mode = #tpu.pipeline_mode<synchronous>, transform_indices = @transform_5, window_bounds = array<i64: 1, 128>}, {pipeline_mode = #tpu.pipeline_mode<synchronous>, transform_indices = @transform_6, window_bounds = array<i64: 8, 128>}, {pipeline_mode = #tpu.pipeline_mode<synchronous>, transform_indices = @transform_7, window_bounds = array<i64: 1, 128>}]} {
    %c0 = arith.constant 0 : index
    %c0_0 = arith.constant 0 : index
    %0 = vector.load %arg1[%c0, %c0_0] : memref<8x128xbf16, #tpu.memory_space<vmem>>, vector<8x128xbf16>
    %c0_1 = arith.constant 0 : index
    %c0_2 = arith.constant 0 : index
    %1 = vector.load %arg3[%c0_1, %c0_2] : memref<128x384xbf16, #tpu.memory_space<vmem>>, vector<128x384xbf16>
    %cst = arith.constant dense<0.000000e+00> : vector<8x384xf32>
    %2 = tpu.matmul %0, %1, %cst {dimension_numbers = #tpu.dot_dimension_numbers<[1], [0], [0], [1], [0, 0, 1, 1], [], []>} : vector<8x128xbf16>, vector<128x384xbf16>, vector<8x384xf32> -> vector<8x384xf32>
    %c0_3 = arith.constant 0 : index
    %c0_4 = arith.constant 0 : index
    %3 = vector.load %arg5[%c0_3, %c0_4] : memref<1x384xf32, #tpu.memory_space<vmem>>, vector<1x384xf32>
    %4 = vector.broadcast %3 : vector<1x384xf32> to vector<8x384xf32>
    %5 = arith.addf %2, %4 : vector<8x384xf32>
    %c0_5 = arith.constant 0 : index
    %c0_6 = arith.constant 0 : index
    %6 = vector.load %arg9[%c0_5, %c0_6] : memref<8x384xf32, #tpu.memory_space<vmem>>, vector<8x384xf32>
    tpu.vector_store %arg9[%c0_5, %c0_6], %5 {strides = array<i32>} : memref<8x384xf32, #tpu.memory_space<vmem>>, vector<8x384xf32>,
    %cst_7 = arith.constant 0.000000e+00 : f32
    %7 = vector.broadcast %cst_7 : f32 to vector<8x128xf32>
    %c0_8 = arith.constant 0 : index
    %c0_9 = arith.constant 0 : index
    %8 = vector.load %arg7[%c0_8, %c0_9] : memref<8x128xf32, #tpu.memory_space<vmem>>, vector<8x128xf32>
    tpu.vector_store %arg7[%c0_8, %c0_9], %7 {strides = array<i32>} : memref<8x128xf32, #tpu.memory_space<vmem>>, vector<8x128xf32>,
    %c0_10 = arith.constant 0 : index
    %c0_11 = arith.constant 0 : index
    %9 = vector.load %arg6[%c0_10, %c0_11] : memref<1x128xf32, #tpu.memory_space<vmem>>, vector<1x128xf32>
    %c0_12 = arith.constant 0 : index
    %c0_13 = arith.constant 0 : index
    %10 = vector.load %arg2[%c0_12, %c0_13] : memref<1x128xf32, #tpu.memory_space<vmem>>, vector<1x128xf32>
    %c0_i32 = arith.constant 0 : i32
    %11 = arith.index_cast %c0_i32 : i32 to index
    %c0_14 = arith.constant 0 : index
    %12 = vector.load %arg9[%11, %c0_14] : memref<8x384xf32, #tpu.memory_space<vmem>>, vector<1x384xf32>
    %13 = arith.truncf %10 : vector<1x128xf32> to vector<1x128xbf16>
    %c0_15 = arith.constant 0 : index
    %c0_16 = arith.constant 0 : index
    %14 = vector.load %arg4[%c0_15, %c0_16] : memref<128x384xbf16, #tpu.memory_space<vmem>>, vector<128x384xbf16>
    %cst_17 = arith.constant dense<0.000000e+00> : vector<1x384xf32>
    %15 = tpu.matmul %13, %14, %cst_17 {dimension_numbers = #tpu.dot_dimension_numbers<[1], [0], [0], [1], [0, 0, 1, 1], [], []>} : vector<1x128xbf16>, vector<128x384xbf16>, vector<1x384xf32> -> vector<1x384xf32>
    %16 = vector.extract_strided_slice %12 {offsets = [0, 0], sizes = [1, 128], strides = [1, 1]} : vector<1x384xf32> to vector<1x128xf32>
    %17 = vector.extract_strided_slice %15 {offsets = [0, 0], sizes = [1, 128], strides = [1, 1]} : vector<1x384xf32> to vector<1x128xf32>
    %18 = arith.addf %16, %17 : vector<1x128xf32>
    %19 = arith.negf %18 : vector<1x128xf32>
    %20 = math.exp %19 : vector<1x128xf32>
    %cst_18 = arith.constant 1.000000e+00 : f32
    %21 = vector.broadcast %cst_18 : f32 to vector<1x128xf32>
    %22 = arith.addf %21, %20 : vector<1x128xf32>
    %23 = arith.divf %21, %22 : vector<1x128xf32>
    %24 = vector.extract_strided_slice %12 {offsets = [0, 128], sizes = [1, 128], strides = [1, 1]} : vector<1x384xf32> to vector<1x128xf32>
    %25 = vector.extract_strided_slice %15 {offsets = [0, 128], sizes = [1, 128], strides = [1, 1]} : vector<1x384xf32> to vector<1x128xf32>
    %26 = arith.addf %24, %25 : vector<1x128xf32>
    %27 = arith.negf %26 : vector<1x128xf32>
    %28 = math.exp %27 : vector<1x128xf32>
    %cst_19 = arith.constant 1.000000e+00 : f32
    %29 = vector.broadcast %cst_19 : f32 to vector<1x128xf32>
    %30 = arith.addf %29, %28 : vector<1x128xf32>
    %31 = arith.divf %29, %30 : vector<1x128xf32>
    %32 = vector.extract_strided_slice %12 {offsets = [0, 256], sizes = [1, 128], strides = [1, 1]} : vector<1x384xf32> to vector<1x128xf32>
    %33 = vector.extract_strided_slice %15 {offsets = [0, 256], sizes = [1, 128], strides = [1, 1]} : vector<1x384xf32> to vector<1x128xf32>
    %34 = arith.addf %33, %9 : vector<1x128xf32>
    %35 = arith.mulf %23, %34 : vector<1x128xf32>
    %36 = arith.addf %32, %35 : vector<1x128xf32>
    %37 = math.tanh %36 : vector<1x128xf32>
    %cst_20 = arith.constant 1.000000e+00 : f32
    %38 = vector.broadcast %cst_20 : f32 to vector<1x128xf32>
    %39 = arith.subf %38, %31 : vector<1x128xf32>
    %40 = arith.mulf %39, %37 : vector<1x128xf32>
    %41 = arith.mulf %31, %10 : vector<1x128xf32>
    %42 = arith.addf %40, %41 : vector<1x128xf32>
    %43 = arith.index_cast %c0_i32 : i32 to index
    %c0_21 = arith.constant 0 : index
    %44 = vector.load %arg7[%43, %c0_21] : memref<8x128xf32, #tpu.memory_space<vmem>>, vector<1x128xf32>
    tpu.vector_store %arg7[%43, %c0_21], %42 {strides = array<i32>} : memref<8x128xf32, #tpu.memory_space<vmem>>, vector<1x128xf32>,
    %c1_i32 = arith.constant 1 : i32
    %45 = arith.index_cast %c1_i32 : i32 to index
    %c0_22 = arith.constant 0 : index
    %46 = vector.load %arg9[%45, %c0_22] : memref<8x384xf32, #tpu.memory_space<vmem>>, vector<1x384xf32>
    %47 = arith.truncf %42 : vector<1x128xf32> to vector<1x128xbf16>
    %c0_23 = arith.constant 0 : index
    %c0_24 = arith.constant 0 : index
    %48 = vector.load %arg4[%c0_23, %c0_24] : memref<128x384xbf16, #tpu.memory_space<vmem>>, vector<128x384xbf16>
    %cst_25 = arith.constant dense<0.000000e+00> : vector<1x384xf32>
    %49 = tpu.matmul %47, %48, %cst_25 {dimension_numbers = #tpu.dot_dimension_numbers<[1], [0], [0], [1], [0, 0, 1, 1], [], []>} : vector<1x128xbf16>, vector<128x384xbf16>, vector<1x384xf32> -> vector<1x384xf32>
    %50 = vector.extract_strided_slice %46 {offsets = [0, 0], sizes = [1, 128], strides = [1, 1]} : vector<1x384xf32> to vector<1x128xf32>
    %51 = vector.extract_strided_slice %49 {offsets = [0, 0], sizes = [1, 128], strides = [1, 1]} : vector<1x384xf32> to vector<1x128xf32>
    %52 = arith.addf %50, %51 : vector<1x128xf32>
    %53 = arith.negf %52 : vector<1x128xf32>
    %54 = math.exp %53 : vector<1x128xf32>
    %cst_26 = arith.constant 1.000000e+00 : f32
    %55 = vector.broadcast %cst_26 : f32 to vector<1x128xf32>
    %56 = arith.addf %55, %54 : vector<1x128xf32>
    %57 = arith.divf %55, %56 : vector<1x128xf32>
    %58 = vector.extract_strided_slice %46 {offsets = [0, 128], sizes = [1, 128], strides = [1, 1]} : vector<1x384xf32> to vector<1x128xf32>
    %59 = vector.extract_strided_slice %49 {offsets = [0, 128], sizes = [1, 128], strides = [1, 1]} : vector<1x384xf32> to vector<1x128xf32>
    %60 = arith.addf %58, %59 : vector<1x128xf32>
    %61 = arith.negf %60 : vector<1x128xf32>
    %62 = math.exp %61 : vector<1x128xf32>
    %cst_27 = arith.constant 1.000000e+00 : f32
    %63 = vector.broadcast %cst_27 : f32 to vector<1x128xf32>
    %64 = arith.addf %63, %62 : vector<1x128xf32>
    %65 = arith.divf %63, %64 : vector<1x128xf32>
    %66 = vector.extract_strided_slice %46 {offsets = [0, 256], sizes = [1, 128], strides = [1, 1]} : vector<1x384xf32> to vector<1x128xf32>
    %67 = vector.extract_strided_slice %49 {offsets = [0, 256], sizes = [1, 128], strides = [1, 1]} : vector<1x384xf32> to vector<1x128xf32>
    %68 = arith.addf %67, %9 : vector<1x128xf32>
    %69 = arith.mulf %57, %68 : vector<1x128xf32>
    %70 = arith.addf %66, %69 : vector<1x128xf32>
    %71 = math.tanh %70 : vector<1x128xf32>
    %cst_28 = arith.constant 1.000000e+00 : f32
    %72 = vector.broadcast %cst_28 : f32 to vector<1x128xf32>
    %73 = arith.subf %72, %65 : vector<1x128xf32>
    %74 = arith.mulf %73, %71 : vector<1x128xf32>
    %75 = arith.mulf %65, %42 : vector<1x128xf32>
    %76 = arith.addf %74, %75 : vector<1x128xf32>
    %77 = arith.index_cast %c1_i32 : i32 to index
    %c0_29 = arith.constant 0 : index
    %78 = vector.load %arg7[%77, %c0_29] : memref<8x128xf32, #tpu.memory_space<vmem>>, vector<1x128xf32>
    tpu.vector_store %arg7[%77, %c0_29], %76 {strides = array<i32>} : memref<8x128xf32, #tpu.memory_space<vmem>>, vector<1x128xf32>,
    %c2_i32 = arith.constant 2 : i32
    %79 = arith.index_cast %c2_i32 : i32 to index
    %c0_30 = arith.constant 0 : index
    %80 = vector.load %arg9[%79, %c0_30] : memref<8x384xf32, #tpu.memory_space<vmem>>, vector<1x384xf32>
    %81 = arith.truncf %76 : vector<1x128xf32> to vector<1x128xbf16>
    %c0_31 = arith.constant 0 : index
    %c0_32 = arith.constant 0 : index
    %82 = vector.load %arg4[%c0_31, %c0_32] : memref<128x384xbf16, #tpu.memory_space<vmem>>, vector<128x384xbf16>
    %cst_33 = arith.constant dense<0.000000e+00> : vector<1x384xf32>
    %83 = tpu.matmul %81, %82, %cst_33 {dimension_numbers = #tpu.dot_dimension_numbers<[1], [0], [0], [1], [0, 0, 1, 1], [], []>} : vector<1x128xbf16>, vector<128x384xbf16>, vector<1x384xf32> -> vector<1x384xf32>
    %84 = vector.extract_strided_slice %80 {offsets = [0, 0], sizes = [1, 128], strides = [1, 1]} : vector<1x384xf32> to vector<1x128xf32>
    %85 = vector.extract_strided_slice %83 {offsets = [0, 0], sizes = [1, 128], strides = [1, 1]} : vector<1x384xf32> to vector<1x128xf32>
    %86 = arith.addf %84, %85 : vector<1x128xf32>
    %87 = arith.negf %86 : vector<1x128xf32>
    %88 = math.exp %87 : vector<1x128xf32>
    %cst_34 = arith.constant 1.000000e+00 : f32
    %89 = vector.broadcast %cst_34 : f32 to vector<1x128xf32>
    %90 = arith.addf %89, %88 : vector<1x128xf32>
    %91 = arith.divf %89, %90 : vector<1x128xf32>
    %92 = vector.extract_strided_slice %80 {offsets = [0, 128], sizes = [1, 128], strides = [1, 1]} : vector<1x384xf32> to vector<1x128xf32>
    %93 = vector.extract_strided_slice %83 {offsets = [0, 128], sizes = [1, 128], strides = [1, 1]} : vector<1x384xf32> to vector<1x128xf32>
    %94 = arith.addf %92, %93 : vector<1x128xf32>
    %95 = arith.negf %94 : vector<1x128xf32>
    %96 = math.exp %95 : vector<1x128xf32>
    %cst_35 = arith.constant 1.000000e+00 : f32
    %97 = vector.broadcast %cst_35 : f32 to vector<1x128xf32>
    %98 = arith.addf %97, %96 : vector<1x128xf32>
    %99 = arith.divf %97, %98 : vector<1x128xf32>
    %100 = vector.extract_strided_slice %80 {offsets = [0, 256], sizes = [1, 128], strides = [1, 1]} : vector<1x384xf32> to vector<1x128xf32>
    %101 = vector.extract_strided_slice %83 {offsets = [0, 256], sizes = [1, 128], strides = [1, 1]} : vector<1x384xf32> to vector<1x128xf32>
    %102 = arith.addf %101, %9 : vector<1x128xf32>
    %103 = arith.mulf %91, %102 : vector<1x128xf32>
    %104 = arith.addf %100, %103 : vector<1x128xf32>
    %105 = math.tanh %104 : vector<1x128xf32>
    %cst_36 = arith.constant 1.000000e+00 : f32
    %106 = vector.broadcast %cst_36 : f32 to vector<1x128xf32>
    %107 = arith.subf %106, %99 : vector<1x128xf32>
    %108 = arith.mulf %107, %105 : vector<1x128xf32>
    %109 = arith.mulf %99, %76 : vector<1x128xf32>
    %110 = arith.addf %108, %109 : vector<1x128xf32>
    %111 = arith.index_cast %c2_i32 : i32 to index
    %c0_37 = arith.constant 0 : index
    %112 = vector.load %arg7[%111, %c0_37] : memref<8x128xf32, #tpu.memory_space<vmem>>, vector<1x128xf32>
    tpu.vector_store %arg7[%111, %c0_37], %110 {strides = array<i32>} : memref<8x128xf32, #tpu.memory_space<vmem>>, vector<1x128xf32>,
    %c3_i32 = arith.constant 3 : i32
    %113 = arith.index_cast %c3_i32 : i32 to index
    %c0_38 = arith.constant 0 : index
    %114 = vector.load %arg9[%113, %c0_38] : memref<8x384xf32, #tpu.memory_space<vmem>>, vector<1x384xf32>
    %115 = arith.truncf %110 : vector<1x128xf32> to vector<1x128xbf16>
    %c0_39 = arith.constant 0 : index
    %c0_40 = arith.constant 0 : index
    %116 = vector.load %arg4[%c0_39, %c0_40] : memref<128x384xbf16, #tpu.memory_space<vmem>>, vector<128x384xbf16>
    %cst_41 = arith.constant dense<0.000000e+00> : vector<1x384xf32>
    %117 = tpu.matmul %115, %116, %cst_41 {dimension_numbers = #tpu.dot_dimension_numbers<[1], [0], [0], [1], [0, 0, 1, 1], [], []>} : vector<1x128xbf16>, vector<128x384xbf16>, vector<1x384xf32> -> vector<1x384xf32>
    %118 = vector.extract_strided_slice %114 {offsets = [0, 0], sizes = [1, 128], strides = [1, 1]} : vector<1x384xf32> to vector<1x128xf32>
    %119 = vector.extract_strided_slice %117 {offsets = [0, 0], sizes = [1, 128], strides = [1, 1]} : vector<1x384xf32> to vector<1x128xf32>
    %120 = arith.addf %118, %119 : vector<1x128xf32>
    %121 = arith.negf %120 : vector<1x128xf32>
    %122 = math.exp %121 : vector<1x128xf32>
    %cst_42 = arith.constant 1.000000e+00 : f32
    %123 = vector.broadcast %cst_42 : f32 to vector<1x128xf32>
    %124 = arith.addf %123, %122 : vector<1x128xf32>
    %125 = arith.divf %123, %124 : vector<1x128xf32>
    %126 = vector.extract_strided_slice %114 {offsets = [0, 128], sizes = [1, 128], strides = [1, 1]} : vector<1x384xf32> to vector<1x128xf32>
    %127 = vector.extract_strided_slice %117 {offsets = [0, 128], sizes = [1, 128], strides = [1, 1]} : vector<1x384xf32> to vector<1x128xf32>
    %128 = arith.addf %126, %127 : vector<1x128xf32>
    %129 = arith.negf %128 : vector<1x128xf32>
    %130 = math.exp %129 : vector<1x128xf32>
    %cst_43 = arith.constant 1.000000e+00 : f32
    %131 = vector.broadcast %cst_43 : f32 to vector<1x128xf32>
    %132 = arith.addf %131, %130 : vector<1x128xf32>
    %133 = arith.divf %131, %132 : vector<1x128xf32>
    %134 = vector.extract_strided_slice %114 {offsets = [0, 256], sizes = [1, 128], strides = [1, 1]} : vector<1x384xf32> to vector<1x128xf32>
    %135 = vector.extract_strided_slice %117 {offsets = [0, 256], sizes = [1, 128], strides = [1, 1]} : vector<1x384xf32> to vector<1x128xf32>
    %136 = arith.addf %135, %9 : vector<1x128xf32>
    %137 = arith.mulf %125, %136 : vector<1x128xf32>
    %138 = arith.addf %134, %137 : vector<1x128xf32>
    %139 = math.tanh %138 : vector<1x128xf32>
    %cst_44 = arith.constant 1.000000e+00 : f32
    %140 = vector.broadcast %cst_44 : f32 to vector<1x128xf32>
    %141 = arith.subf %140, %133 : vector<1x128xf32>
    %142 = arith.mulf %141, %139 : vector<1x128xf32>
    %143 = arith.mulf %133, %110 : vector<1x128xf32>
    %144 = arith.addf %142, %143 : vector<1x128xf32>
    %145 = arith.index_cast %c3_i32 : i32 to index
    %c0_45 = arith.constant 0 : index
    %146 = vector.load %arg7[%145, %c0_45] : memref<8x128xf32, #tpu.memory_space<vmem>>, vector<1x128xf32>
    tpu.vector_store %arg7[%145, %c0_45], %144 {strides = array<i32>} : memref<8x128xf32, #tpu.memory_space<vmem>>, vector<1x128xf32>,
    %c4_i32 = arith.constant 4 : i32
    %147 = arith.index_cast %c4_i32 : i32 to index
    %c0_46 = arith.constant 0 : index
    %148 = vector.load %arg9[%147, %c0_46] : memref<8x384xf32, #tpu.memory_space<vmem>>, vector<1x384xf32>
    %149 = arith.truncf %144 : vector<1x128xf32> to vector<1x128xbf16>
    %c0_47 = arith.constant 0 : index
    %c0_48 = arith.constant 0 : index
    %150 = vector.load %arg4[%c0_47, %c0_48] : memref<128x384xbf16, #tpu.memory_space<vmem>>, vector<128x384xbf16>
    %cst_49 = arith.constant dense<0.000000e+00> : vector<1x384xf32>
    %151 = tpu.matmul %149, %150, %cst_49 {dimension_numbers = #tpu.dot_dimension_numbers<[1], [0], [0], [1], [0, 0, 1, 1], [], []>} : vector<1x128xbf16>, vector<128x384xbf16>, vector<1x384xf32> -> vector<1x384xf32>
    %152 = vector.extract_strided_slice %148 {offsets = [0, 0], sizes = [1, 128], strides = [1, 1]} : vector<1x384xf32> to vector<1x128xf32>
    %153 = vector.extract_strided_slice %151 {offsets = [0, 0], sizes = [1, 128], strides = [1, 1]} : vector<1x384xf32> to vector<1x128xf32>
    %154 = arith.addf %152, %153 : vector<1x128xf32>
    %155 = arith.negf %154 : vector<1x128xf32>
    %156 = math.exp %155 : vector<1x128xf32>
    %cst_50 = arith.constant 1.000000e+00 : f32
    %157 = vector.broadcast %cst_50 : f32 to vector<1x128xf32>
    %158 = arith.addf %157, %156 : vector<1x128xf32>
    %159 = arith.divf %157, %158 : vector<1x128xf32>
    %160 = vector.extract_strided_slice %148 {offsets = [0, 128], sizes = [1, 128], strides = [1, 1]} : vector<1x384xf32> to vector<1x128xf32>
    %161 = vector.extract_strided_slice %151 {offsets = [0, 128], sizes = [1, 128], strides = [1, 1]} : vector<1x384xf32> to vector<1x128xf32>
    %162 = arith.addf %160, %161 : vector<1x128xf32>
    %163 = arith.negf %162 : vector<1x128xf32>
    %164 = math.exp %163 : vector<1x128xf32>
    %cst_51 = arith.constant 1.000000e+00 : f32
    %165 = vector.broadcast %cst_51 : f32 to vector<1x128xf32>
    %166 = arith.addf %165, %164 : vector<1x128xf32>
    %167 = arith.divf %165, %166 : vector<1x128xf32>
    %168 = vector.extract_strided_slice %148 {offsets = [0, 256], sizes = [1, 128], strides = [1, 1]} : vector<1x384xf32> to vector<1x128xf32>
    %169 = vector.extract_strided_slice %151 {offsets = [0, 256], sizes = [1, 128], strides = [1, 1]} : vector<1x384xf32> to vector<1x128xf32>
    %170 = arith.addf %169, %9 : vector<1x128xf32>
    %171 = arith.mulf %159, %170 : vector<1x128xf32>
    %172 = arith.addf %168, %171 : vector<1x128xf32>
    %173 = math.tanh %172 : vector<1x128xf32>
    %cst_52 = arith.constant 1.000000e+00 : f32
    %174 = vector.broadcast %cst_52 : f32 to vector<1x128xf32>
    %175 = arith.subf %174, %167 : vector<1x128xf32>
    %176 = arith.mulf %175, %173 : vector<1x128xf32>
    %177 = arith.mulf %167, %144 : vector<1x128xf32>
    %178 = arith.addf %176, %177 : vector<1x128xf32>
    %179 = arith.index_cast %c4_i32 : i32 to index
    %c0_53 = arith.constant 0 : index
    %180 = vector.load %arg7[%179, %c0_53] : memref<8x128xf32, #tpu.memory_space<vmem>>, vector<1x128xf32>
    tpu.vector_store %arg7[%179, %c0_53], %178 {strides = array<i32>} : memref<8x128xf32, #tpu.memory_space<vmem>>, vector<1x128xf32>,
    %c5_i32 = arith.constant 5 : i32
    %181 = arith.index_cast %c5_i32 : i32 to index
    %c0_54 = arith.constant 0 : index
    %182 = vector.load %arg9[%181, %c0_54] : memref<8x384xf32, #tpu.memory_space<vmem>>, vector<1x384xf32>
    %183 = arith.truncf %178 : vector<1x128xf32> to vector<1x128xbf16>
    %c0_55 = arith.constant 0 : index
    %c0_56 = arith.constant 0 : index
    %184 = vector.load %arg4[%c0_55, %c0_56] : memref<128x384xbf16, #tpu.memory_space<vmem>>, vector<128x384xbf16>
    %cst_57 = arith.constant dense<0.000000e+00> : vector<1x384xf32>
    %185 = tpu.matmul %183, %184, %cst_57 {dimension_numbers = #tpu.dot_dimension_numbers<[1], [0], [0], [1], [0, 0, 1, 1], [], []>} : vector<1x128xbf16>, vector<128x384xbf16>, vector<1x384xf32> -> vector<1x384xf32>
    %186 = vector.extract_strided_slice %182 {offsets = [0, 0], sizes = [1, 128], strides = [1, 1]} : vector<1x384xf32> to vector<1x128xf32>
    %187 = vector.extract_strided_slice %185 {offsets = [0, 0], sizes = [1, 128], strides = [1, 1]} : vector<1x384xf32> to vector<1x128xf32>
    %188 = arith.addf %186, %187 : vector<1x128xf32>
    %189 = arith.negf %188 : vector<1x128xf32>
    %190 = math.exp %189 : vector<1x128xf32>
    %cst_58 = arith.constant 1.000000e+00 : f32
    %191 = vector.broadcast %cst_58 : f32 to vector<1x128xf32>
    %192 = arith.addf %191, %190 : vector<1x128xf32>
    %193 = arith.divf %191, %192 : vector<1x128xf32>
    %194 = vector.extract_strided_slice %182 {offsets = [0, 128], sizes = [1, 128], strides = [1, 1]} : vector<1x384xf32> to vector<1x128xf32>
    %195 = vector.extract_strided_slice %185 {offsets = [0, 128], sizes = [1, 128], strides = [1, 1]} : vector<1x384xf32> to vector<1x128xf32>
    %196 = arith.addf %194, %195 : vector<1x128xf32>
    %197 = arith.negf %196 : vector<1x128xf32>
    %198 = math.exp %197 : vector<1x128xf32>
    %cst_59 = arith.constant 1.000000e+00 : f32
    %199 = vector.broadcast %cst_59 : f32 to vector<1x128xf32>
    %200 = arith.addf %199, %198 : vector<1x128xf32>
    %201 = arith.divf %199, %200 : vector<1x128xf32>
    %202 = vector.extract_strided_slice %182 {offsets = [0, 256], sizes = [1, 128], strides = [1, 1]} : vector<1x384xf32> to vector<1x128xf32>
    %203 = vector.extract_strided_slice %185 {offsets = [0, 256], sizes = [1, 128], strides = [1, 1]} : vector<1x384xf32> to vector<1x128xf32>
    %204 = arith.addf %203, %9 : vector<1x128xf32>
    %205 = arith.mulf %193, %204 : vector<1x128xf32>
    %206 = arith.addf %202, %205 : vector<1x128xf32>
    %207 = math.tanh %206 : vector<1x128xf32>
    %cst_60 = arith.constant 1.000000e+00 : f32
    %208 = vector.broadcast %cst_60 : f32 to vector<1x128xf32>
    %209 = arith.subf %208, %201 : vector<1x128xf32>
    %210 = arith.mulf %209, %207 : vector<1x128xf32>
    %211 = arith.mulf %201, %178 : vector<1x128xf32>
    %212 = arith.addf %210, %211 : vector<1x128xf32>
    %213 = arith.index_cast %c5_i32 : i32 to index
    %c0_61 = arith.constant 0 : index
    %214 = vector.load %arg7[%213, %c0_61] : memref<8x128xf32, #tpu.memory_space<vmem>>, vector<1x128xf32>
    tpu.vector_store %arg7[%213, %c0_61], %212 {strides = array<i32>} : memref<8x128xf32, #tpu.memory_space<vmem>>, vector<1x128xf32>,
    %c6_i32 = arith.constant 6 : i32
    %215 = arith.index_cast %c6_i32 : i32 to index
    %c0_62 = arith.constant 0 : index
    %216 = vector.load %arg9[%215, %c0_62] : memref<8x384xf32, #tpu.memory_space<vmem>>, vector<1x384xf32>
    %217 = arith.truncf %212 : vector<1x128xf32> to vector<1x128xbf16>
    %c0_63 = arith.constant 0 : index
    %c0_64 = arith.constant 0 : index
    %218 = vector.load %arg4[%c0_63, %c0_64] : memref<128x384xbf16, #tpu.memory_space<vmem>>, vector<128x384xbf16>
    %cst_65 = arith.constant dense<0.000000e+00> : vector<1x384xf32>
    %219 = tpu.matmul %217, %218, %cst_65 {dimension_numbers = #tpu.dot_dimension_numbers<[1], [0], [0], [1], [0, 0, 1, 1], [], []>} : vector<1x128xbf16>, vector<128x384xbf16>, vector<1x384xf32> -> vector<1x384xf32>
    %220 = vector.extract_strided_slice %216 {offsets = [0, 0], sizes = [1, 128], strides = [1, 1]} : vector<1x384xf32> to vector<1x128xf32>
    %221 = vector.extract_strided_slice %219 {offsets = [0, 0], sizes = [1, 128], strides = [1, 1]} : vector<1x384xf32> to vector<1x128xf32>
    %222 = arith.addf %220, %221 : vector<1x128xf32>
    %223 = arith.negf %222 : vector<1x128xf32>
    %224 = math.exp %223 : vector<1x128xf32>
    %cst_66 = arith.constant 1.000000e+00 : f32
    %225 = vector.broadcast %cst_66 : f32 to vector<1x128xf32>
    %226 = arith.addf %225, %224 : vector<1x128xf32>
    %227 = arith.divf %225, %226 : vector<1x128xf32>
    %228 = vector.extract_strided_slice %216 {offsets = [0, 128], sizes = [1, 128], strides = [1, 1]} : vector<1x384xf32> to vector<1x128xf32>
    %229 = vector.extract_strided_slice %219 {offsets = [0, 128], sizes = [1, 128], strides = [1, 1]} : vector<1x384xf32> to vector<1x128xf32>
    %230 = arith.addf %228, %229 : vector<1x128xf32>
    %231 = arith.negf %230 : vector<1x128xf32>
    %232 = math.exp %231 : vector<1x128xf32>
    %cst_67 = arith.constant 1.000000e+00 : f32
    %233 = vector.broadcast %cst_67 : f32 to vector<1x128xf32>
    %234 = arith.addf %233, %232 : vector<1x128xf32>
    %235 = arith.divf %233, %234 : vector<1x128xf32>
    %236 = vector.extract_strided_slice %216 {offsets = [0, 256], sizes = [1, 128], strides = [1, 1]} : vector<1x384xf32> to vector<1x128xf32>
    %237 = vector.extract_strided_slice %219 {offsets = [0, 256], sizes = [1, 128], strides = [1, 1]} : vector<1x384xf32> to vector<1x128xf32>
    %238 = arith.addf %237, %9 : vector<1x128xf32>
    %239 = arith.mulf %227, %238 : vector<1x128xf32>
    %240 = arith.addf %236, %239 : vector<1x128xf32>
    %241 = math.tanh %240 : vector<1x128xf32>
    %cst_68 = arith.constant 1.000000e+00 : f32
    %242 = vector.broadcast %cst_68 : f32 to vector<1x128xf32>
    %243 = arith.subf %242, %235 : vector<1x128xf32>
    %244 = arith.mulf %243, %241 : vector<1x128xf32>
    %245 = arith.mulf %235, %212 : vector<1x128xf32>
    %246 = arith.addf %244, %245 : vector<1x128xf32>
    %247 = arith.index_cast %c6_i32 : i32 to index
    %c0_69 = arith.constant 0 : index
    %248 = vector.load %arg7[%247, %c0_69] : memref<8x128xf32, #tpu.memory_space<vmem>>, vector<1x128xf32>
    tpu.vector_store %arg7[%247, %c0_69], %246 {strides = array<i32>} : memref<8x128xf32, #tpu.memory_space<vmem>>, vector<1x128xf32>,
    %c7_i32 = arith.constant 7 : i32
    %249 = arith.index_cast %c7_i32 : i32 to index
    %c0_70 = arith.constant 0 : index
    %250 = vector.load %arg9[%249, %c0_70] : memref<8x384xf32, #tpu.memory_space<vmem>>, vector<1x384xf32>
    %251 = arith.truncf %246 : vector<1x128xf32> to vector<1x128xbf16>
    %c0_71 = arith.constant 0 : index
    %c0_72 = arith.constant 0 : index
    %252 = vector.load %arg4[%c0_71, %c0_72] : memref<128x384xbf16, #tpu.memory_space<vmem>>, vector<128x384xbf16>
    %cst_73 = arith.constant dense<0.000000e+00> : vector<1x384xf32>
    %253 = tpu.matmul %251, %252, %cst_73 {dimension_numbers = #tpu.dot_dimension_numbers<[1], [0], [0], [1], [0, 0, 1, 1], [], []>} : vector<1x128xbf16>, vector<128x384xbf16>, vector<1x384xf32> -> vector<1x384xf32>
    %254 = vector.extract_strided_slice %250 {offsets = [0, 0], sizes = [1, 128], strides = [1, 1]} : vector<1x384xf32> to vector<1x128xf32>
    %255 = vector.extract_strided_slice %253 {offsets = [0, 0], sizes = [1, 128], strides = [1, 1]} : vector<1x384xf32> to vector<1x128xf32>
    %256 = arith.addf %254, %255 : vector<1x128xf32>
    %257 = arith.negf %256 : vector<1x128xf32>
    %258 = math.exp %257 : vector<1x128xf32>
    %cst_74 = arith.constant 1.000000e+00 : f32
    %259 = vector.broadcast %cst_74 : f32 to vector<1x128xf32>
    %260 = arith.addf %259, %258 : vector<1x128xf32>
    %261 = arith.divf %259, %260 : vector<1x128xf32>
    %262 = vector.extract_strided_slice %250 {offsets = [0, 128], sizes = [1, 128], strides = [1, 1]} : vector<1x384xf32> to vector<1x128xf32>
    %263 = vector.extract_strided_slice %253 {offsets = [0, 128], sizes = [1, 128], strides = [1, 1]} : vector<1x384xf32> to vector<1x128xf32>
    %264 = arith.addf %262, %263 : vector<1x128xf32>
    %265 = arith.negf %264 : vector<1x128xf32>
    %266 = math.exp %265 : vector<1x128xf32>
    %cst_75 = arith.constant 1.000000e+00 : f32
    %267 = vector.broadcast %cst_75 : f32 to vector<1x128xf32>
    %268 = arith.addf %267, %266 : vector<1x128xf32>
    %269 = arith.divf %267, %268 : vector<1x128xf32>
    %270 = vector.extract_strided_slice %250 {offsets = [0, 256], sizes = [1, 128], strides = [1, 1]} : vector<1x384xf32> to vector<1x128xf32>
    %271 = vector.extract_strided_slice %253 {offsets = [0, 256], sizes = [1, 128], strides = [1, 1]} : vector<1x384xf32> to vector<1x128xf32>
    %272 = arith.addf %271, %9 : vector<1x128xf32>
    %273 = arith.mulf %261, %272 : vector<1x128xf32>
    %274 = arith.addf %270, %273 : vector<1x128xf32>
    %275 = math.tanh %274 : vector<1x128xf32>
    %cst_76 = arith.constant 1.000000e+00 : f32
    %276 = vector.broadcast %cst_76 : f32 to vector<1x128xf32>
    %277 = arith.subf %276, %269 : vector<1x128xf32>
    %278 = arith.mulf %277, %275 : vector<1x128xf32>
    %279 = arith.mulf %269, %246 : vector<1x128xf32>
    %280 = arith.addf %278, %279 : vector<1x128xf32>
    %281 = arith.index_cast %c7_i32 : i32 to index
    %c0_77 = arith.constant 0 : index
    %282 = vector.load %arg7[%281, %c0_77] : memref<8x128xf32, #tpu.memory_space<vmem>>, vector<1x128xf32>
    tpu.vector_store %arg7[%281, %c0_77], %280 {strides = array<i32>} : memref<8x128xf32, #tpu.memory_space<vmem>>, vector<1x128xf32>,
    %c8_i32 = arith.constant 8 : i32
    %c0_78 = arith.constant 0 : index
    %c0_79 = arith.constant 0 : index
    %283 = vector.load %arg8[%c0_78, %c0_79] : memref<1x128xf32, #tpu.memory_space<vmem>>, vector<1x128xf32>
    tpu.vector_store %arg8[%c0_78, %c0_79], %280 {strides = array<i32>} : memref<1x128xf32, #tpu.memory_space<vmem>>, vector<1x128xf32>,
    return
  }
  func.func @transform_0(%arg0: i32) -> (i32, i32) {
    %c0_i32 = arith.constant 0 : i32
    %c0_i32_0 = arith.constant 0 : i32
    %c0_i32_1 = arith.constant 0 : i32
    return %c0_i32, %c0_i32_0 : i32, i32
  }
  func.func @transform_1(%arg0: i32) -> (i32, i32) {
    %c0_i32 = arith.constant 0 : i32
    %c0_i32_0 = arith.constant 0 : i32
    %c0_i32_1 = arith.constant 0 : i32
    return %c0_i32, %c0_i32_0 : i32, i32
  }
  func.func @transform_2(%arg0: i32) -> (i32, i32) {
    %c0_i32 = arith.constant 0 : i32
    %c0_i32_0 = arith.constant 0 : i32
    %c0_i32_1 = arith.constant 0 : i32
    return %c0_i32, %c0_i32_0 : i32, i32
  }
  func.func @transform_3(%arg0: i32) -> (i32, i32) {
    %c0_i32 = arith.constant 0 : i32
    %c0_i32_0 = arith.constant 0 : i32
    %c0_i32_1 = arith.constant 0 : i32
    return %c0_i32, %c0_i32_0 : i32, i32
  }
  func.func @transform_4(%arg0: i32) -> (i32, i32) {
    %c0_i32 = arith.constant 0 : i32
    %c0_i32_0 = arith.constant 0 : i32
    %c0_i32_1 = arith.constant 0 : i32
    return %c0_i32, %c0_i32_0 : i32, i32
  }
  func.func @transform_5(%arg0: i32) -> (i32, i32) {
    %c0_i32 = arith.constant 0 : i32
    %c0_i32_0 = arith.constant 0 : i32
    %c0_i32_1 = arith.constant 0 : i32
    return %c0_i32, %c0_i32_0 : i32, i32
  }
  func.func @transform_6(%arg0: i32) -> (i32, i32) {
    %c0_i32 = arith.constant 0 : i32
    %c0_i32_0 = arith.constant 0 : i32
    %c0_i32_1 = arith.constant 0 : i32
    return %c0_i32, %c0_i32_0 : i32, i32
  }
  func.func @transform_7(%arg0: i32) -> (i32, i32) {
    %c0_i32 = arith.constant 0 : i32
    %c0_i32_0 = arith.constant 0 : i32
    %c0_i32_1 = arith.constant 0 : i32
    return %c0_i32, %c0_i32_0 : i32, i32
  }
}

</mosaic_0001>

<bundles_post_ra>
// kernel: tpu_custom_call.1
= control target key start
LH: loop header
LB: loop body
LE: loop exit
PB: predicated region body
PF: predicated region fallthrough
CT: control target
= control target key end

     0   :  { %13 = vsyncpa [#allocation4], 0  ;;  %s3929_s0 = inlined_call_operand.hbm [shape: bf16[8,128], index: 0, kind: input, shape index: {}]   ;;  %s3930_s1 = inlined_call_operand.hbm [shape: f32[1,128], index: 1, kind: input, shape index: {}]   ;;  %s3931_s2 = inlined_call_operand.hbm [shape: bf16[128,384], index: 2, kind: input, shape index: {}]   ;;  %s3932_s3 = inlined_call_operand.hbm [shape: bf16[128,384], index: 3, kind: input, shape index: {}]   ;;  %s3933_s4 = inlined_call_operand.vmem [shape: f32[1,384], index: 4, kind: input, shape index: {}]   ;;  %s3934_s5 = inlined_call_operand.vmem [shape: f32[1,128], index: 5, kind: input, shape index: {}]   ;;  %s3935_s6 = inlined_call_operand.hbm [shape: f32[8,128], index: 6, kind: output, shape index: {0}]   ;;  %s3936_s7 = inlined_call_operand.hbm [shape: f32[1,128], index: 7, kind: output, shape index: {1}]  }
   0x1   :  { %14 = vsyncpa [#allocation7], 0 }
   0x2   :  { %15 = vsyncpa [#allocation10], 0 }
   0x3   :  { %16 = vsyncpa [#allocation5], 0  ;;  %s34_s26 = sshll.u32 %s3930_s1, 4  ;;  %s35_s26 = int_to_ptr.hbm [resolvable:$true] %s34_s26 }
   0x4   :  { %17 = vsyncpa [#allocation13], 0  ;;  %s3723_s27 = smov [#allocation6]   ;;  %s23_s8 = sshll.u32 %s3929_s0, 4  ;;  %s24_s8 = int_to_ptr.hbm [resolvable:$true] %s23_s8 }
   0x5   :  { %s36_s28 = sshll.u32 %s3723_s27, 4  ;;  %s3724_s9 = smov [#allocation3]   ;;  %s37_s28 = int_to_ptr.vmem [resolvable:$true] %s36_s28 }
   0x6   :  { %39 = dma.hbm_to_vmem [thread:$0]  %s35_s26, 16, %s37_s28, [#allocation7]  }
   0x7   :  { %s25_s10 = sshll.u32 %s3724_s9, 4  ;;  %s44_s13 = sshll.u32 %s3931_s2, 4  ;;  %s26_s10 = int_to_ptr.vmem [resolvable:$true] %s25_s10  ;;  %s45_s13 = int_to_ptr.hbm [resolvable:$true] %s44_s13 }
   0x8   :  { %28 = dma.hbm_to_vmem [thread:$0]  %s24_s8, 64, %s26_s10, [#allocation4]  }
   0x9   :  { %s3725_s1 = smov [#allocation8]   ;;  %s57_s17 = sshll.u32 %s3932_s3, 4  ;;  %s58_s17 = int_to_ptr.hbm [resolvable:$true] %s57_s17 }
   0xa   :  { %s46_s14 = sshll.u32 %s3725_s1, 4  ;;  %s3726_s18 = smov 192   ;;  %s47_s14 = int_to_ptr.vmem [resolvable:$true] %s46_s14 }
   0xb   :  { %s3727_s0 = smov 12   ;;  %s3728_s19 = smov [#allocation9]  }
   0xc   :  { %52 = dma.hbm_to_vmem [thread:$0]  %s45_s13, 3072, %s47_s14, [#allocation7], %s3726_s18, %s3726_s18, %s3727_s0  }
   0xd   :  { %s59_s20 = sshll.u32 %s3728_s19, 4  ;;  %s60_s20 = int_to_ptr.vmem [resolvable:$true] %s59_s20 }
   0xe   :  { %65 = dma.hbm_to_vmem [thread:$0]  %s58_s17, 3072, %s60_s20, [#allocation10], %s3726_s18, %s3726_s18, %s3727_s0  }
   0xf   :  { %3713 = dma.done.wait [#allocation4], 64  }
  0x10   :  { %3714 = vsyncadd [#allocation4], 4294967232 }
  0x11   :  { %3715 = dma.done.wait [#allocation7], 3088  }
  0x12   :  { %3716 = vsyncadd [#allocation7], 4294964208 }
  0x13   :  { %3717 = dma.done.wait [#allocation10], 3072  }
  0x14   :  { %3718 = vsyncadd [#allocation10], 4294964224  ;;  %v2469_v0 = vld [vmem:[#allocation8 + $0xa8] sm:$0xf]  ;;  %v3285_v1 = vld [vmem:[#allocation8 + $0xb0] sm:$0xf0] }
  0x15   :  { %v2477_v2 = vld [vmem:[#allocation8 + $0xb0] sm:$0xf]  ;;  %v2470_v3 = vor.u32 %v3285_v1, %v2469_v0  ;;  %v3286_v4 = vld [vmem:[#allocation8 + $0xb8] sm:$0xf0]  ;;  %v3284_v5 = vld [vmem:[#allocation8 + $0xac] sm:$0xf] }
  0x16   :  { %v2471_v6 = vld [vmem:[#allocation8 + $0xb4] sm:$0xf0]  ;;  %v2478_v7 = vor.u32 %v3286_v4, %v2477_v2  ;;  %v2457_v9 = vld [vmem:[#allocation8 + $0x90] sm:$0xf]  ;;  %v3282_v10 = vld [vmem:[#allocation8 + $0x98] sm:$0xf0] }
  0x17   :  { %v2474_v8 = vor.u32 %v3284_v5, %v2471_v6  ;;  %v2465_v11 = vld [vmem:[#allocation8 + $0x98] sm:$0xf]  ;;  %255 = vmatpush.bf16.msra.mxu0 %v2470_v3  ;;  %v2458_v12 = vor.u32 %v3282_v10, %v2457_v9  ;;  %v3283_v13 = vld [vmem:[#allocation8 + $0xa0] sm:$0xf0]  ;;  %v3281_v14 = vld [vmem:[#allocation8 + $0x94] sm:$0xf] }
  0x18   :  { %v2459_v15 = vld [vmem:[#allocation8 + $0x9c] sm:$0xf0]  ;;  %281 = vmatpush.bf16.msra.mxu2 %v2478_v7  ;;  %v2466_v16 = vor.u32 %v3283_v13, %v2465_v11  ;;  %v2565_v18 = vld [vmem:[#allocation9 + $0xa8] sm:$0xf]  ;;  %v3309_v19 = vld [vmem:[#allocation9 + $0xb0] sm:$0xf0] }
  0x19   :  { %268 = vmatpush.bf16.msra.mxu1 %v2474_v8  ;;  %v2462_v17 = vor.u32 %v3281_v14, %v2459_v15  ;;  %v2445_v20 = vld [vmem:[#allocation8 + $0x78] sm:$0xf]  ;;  %v2566_v21 = vor.u32 %v3309_v19, %v2565_v18  ;;  %v3279_v22 = vld [vmem:[#allocation8 + $0x80] sm:$0xf0]  ;;  %v2453_v23 = vld [vmem:[#allocation8 + $0x80] sm:$0xf] }
  0x1a   :  { %v3280_v24 = vld [vmem:[#allocation8 + $0x88] sm:$0xf0]  ;;  %v3278_v25 = vld [vmem:[#allocation8 + $0x7c] sm:$0xf]  ;;  %v2447_v26 = vld [vmem:[#allocation8 + $0x84] sm:$0xf0]  ;;  %v2446_v28 = vor.u32 %v3279_v22, %v2445_v20 }
  0x1b   :  { %v2553_v27 = vld [vmem:[#allocation9 + $0x90] sm:$0xf]  ;;  %256 = vmatpush.bf16.msra.mxu0 %v2458_v12  ;;  %462 = vmatpush.bf16.msra.mxu3 %v2566_v21  ;;  %v3306_v29 = vld [vmem:[#allocation9 + $0x98] sm:$0xf0]  ;;  %v2433_v30 = vld [vmem:[#allocation8 + $0x60] sm:$0xf]  ;;  %v2454_v32 = vor.u32 %v3280_v24, %v2453_v23  ;;  %v2450_v33 = vor.u32 %v3278_v25, %v2447_v26 }
  0x1c   :  { %v3276_v31 = vld [vmem:[#allocation8 + $0x68] sm:$0xf0]  ;;  %282 = vmatpush.bf16.msra.mxu2 %v2466_v16  ;;  %v2554_v34 = vor.u32 %v3306_v29, %v2553_v27  ;;  %v2441_v35 = vld [vmem:[#allocation8 + $0x68] sm:$0xf]  ;;  %v3277_v36 = vld [vmem:[#allocation8 + $0x70] sm:$0xf0] }
  0x1d   :  { %269 = vmatpush.bf16.msra.mxu1 %v2462_v17  ;;  %v3275_v37 = vld [vmem:[#allocation8 + $0x64] sm:$0xf]  ;;  %v2435_v38 = vld [vmem:[#allocation8 + $0x6c] sm:$0xf0]  ;;  %v2541_v39 = vld [vmem:[#allocation9 + $0x78] sm:$0xf]  ;;  %v2434_v41 = vor.u32 %v3276_v31, %v2433_v30  ;;  %v2442_v45 = vor.u32 %v3277_v36, %v2441_v35 }
  0x1e   :  { %v3303_v40 = vld [vmem:[#allocation9 + $0x80] sm:$0xf0]  ;;  %v2421_v43 = vld [vmem:[#allocation8 + $0x48] sm:$0xf]  ;;  %v3273_v44 = vld [vmem:[#allocation8 + $0x50] sm:$0xf0]  ;;  %v2438_v46 = vor.u32 %v3275_v37, %v2435_v38 }
  0x1f   :  { %257 = vmatpush.bf16.msra.mxu0 %v2446_v28  ;;  %463 = vmatpush.bf16.msra.mxu3 %v2554_v34  ;;  %v2542_v42 = vor.u32 %v3303_v40, %v2541_v39  ;;  %v2429_v47 = vld [vmem:[#allocation8 + $0x50] sm:$0xf]  ;;  %v2529_v48 = vld [vmem:[#allocation9 + $0x60] sm:$0xf]  ;;  %v3300_v49 = vld [vmem:[#allocation9 + $0x68] sm:$0xf0]  ;;  %v2422_v53 = vor.u32 %v3273_v44, %v2421_v43 }
  0x20   :  { %283 = vmatpush.bf16.msra.mxu2 %v2454_v32  ;;  %v3274_v50 = vld [vmem:[#allocation8 + $0x58] sm:$0xf0]  ;;  %v3272_v51 = vld [vmem:[#allocation8 + $0x4c] sm:$0xf]  ;;  %v2423_v52 = vld [vmem:[#allocation8 + $0x54] sm:$0xf0]  ;;  %v2530_v54 = vor.u32 %v3300_v49, %v2529_v48 }
  0x21   :  { %270 = vmatpush.bf16.msra.mxu1 %v2450_v33  ;;  %v2409_v55 = vld [vmem:[#allocation8 + $0x30] sm:$0xf]  ;;  %v3270_v56 = vld [vmem:[#allocation8 + $0x38] sm:$0xf0]  ;;  %v2430_v57 = vor.u32 %v3274_v50, %v2429_v47  ;;  %v2426_v58 = vor.u32 %v3272_v51, %v2423_v52  ;;  %v2417_v59 = vld [vmem:[#allocation8 + $0x38] sm:$0xf] }
  0x22   :  { %v2517_v60 = vld [vmem:[#allocation9 + $0x48] sm:$0xf]  ;;  %v3297_v61 = vld [vmem:[#allocation9 + $0x50] sm:$0xf0]  ;;  %v3271_v62 = vld [vmem:[#allocation8 + $0x40] sm:$0xf0]  ;;  %v2410_v1 = vor.u32 %v3270_v56, %v2409_v55 }
  0x23   :  { %258 = vmatpush.bf16.msra.mxu0 %v2434_v41  ;;  %464 = vmatpush.bf16.msra.mxu3 %v2542_v42  ;;  %v3269_v63 = vld [vmem:[#allocation8 + $0x34] sm:$0xf]  ;;  %v2411_v0 = vld [vmem:[#allocation8 + $0x3c] sm:$0xf0]  ;;  %v2518_v2 = vor.u32 %v3297_v61, %v2517_v60  ;;  %v2397_v3 = vld [vmem:[#allocation8 + $0x18] sm:$0xf]  ;;  %v2418_v5 = vor.u32 %v3271_v62, %v2417_v59 }
  0x24   :  { %284 = vmatpush.bf16.msra.mxu2 %v2442_v45  ;;  %v3267_v4 = vld [vmem:[#allocation8 + $0x20] sm:$0xf0]  ;;  %v2414_v6 = vor.u32 %v3269_v63, %v2411_v0  ;;  %v2405_v7 = vld [vmem:[#allocation8 + $0x20] sm:$0xf]  ;;  %v2505_v8 = vld [vmem:[#allocation9 + $0x30] sm:$0xf] }
  0x25   :  { %271 = vmatpush.bf16.msra.mxu1 %v2438_v46  ;;  %v3294_v9 = vld [vmem:[#allocation9 + $0x38] sm:$0xf0]  ;;  %v3268_v10 = vld [vmem:[#allocation8 + $0x28] sm:$0xf0]  ;;  %v2399_v12 = vld [vmem:[#allocation8 + $0x24] sm:$0xf0]  ;;  %v2398_v13 = vor.u32 %v3267_v4, %v2397_v3 }
  0x26   :  { %v3266_v11 = vld [vmem:[#allocation8 + $0x1c] sm:$0xf]  ;;  %v2506_v14 = vor.u32 %v3294_v9, %v2505_v8  ;;  %v2385_v15 = vld [vmem:[#allocation8] sm:$0xf]  ;;  %v3264_v16 = vld [vmem:[#allocation8 + $0x8] sm:$0xf0]  ;;  %v2406_v17 = vor.u32 %v3268_v10, %v2405_v7 }
  0x27   :  { %259 = vmatpush.bf16.msra.mxu0 %v2422_v53  ;;  %465 = vmatpush.bf16.msra.mxu3 %v2530_v54  ;;  %v2402_v18 = vor.u32 %v3266_v11, %v2399_v12  ;;  %v2393_v19 = vld [vmem:[#allocation8 + $0x8] sm:$0xf]  ;;  %v2493_v20 = vld [vmem:[#allocation9 + $0x18] sm:$0xf]  ;;  %v3291_v21 = vld [vmem:[#allocation9 + $0x20] sm:$0xf0]  ;;  %v2386_v27 = vor.u32 %v3264_v16, %v2385_v15 }
  0x28   :  { %285 = vmatpush.bf16.msra.mxu2 %v2430_v57  ;;  %v3265_v22 = vld [vmem:[#allocation8 + $0x10] sm:$0xf0]  ;;  %v3308_v23 = vld [vmem:[#allocation9 + $0xac] sm:$0xf]  ;;  %v2567_v24 = vld [vmem:[#allocation9 + $0xb4] sm:$0xf0]  ;;  %v2494_v28 = vor.u32 %v3291_v21, %v2493_v20 }
  0x29   :  { %272 = vmatpush.bf16.msra.mxu1 %v2426_v58  ;;  %v3263_v25 = vld [vmem:[#allocation8 + $0x4] sm:$0xf]  ;;  %v2387_v26 = vld [vmem:[#allocation8 + $0xc] sm:$0xf0]  ;;  %v3310_v30 = vld [vmem:[#allocation9 + $0xb8] sm:$0xf0]  ;;  %v2394_v31 = vor.u32 %v3265_v22, %v2393_v19  ;;  %v2570_v32 = vor.u32 %v3308_v23, %v2567_v24 }
  0x2a   :  { %v2573_v29 = vld [vmem:[#allocation9 + $0xb0] sm:$0xf]  ;;  %v2481_v33 = vld [vmem:[#allocation9] sm:$0xf]  ;;  %v3288_v34 = vld [vmem:[#allocation9 + $0x8] sm:$0xf0]  ;;  %v2390_v35 = vor.u32 %v3263_v25, %v2387_v26 }
  0x2b   :  { %260 = vmatpush.bf16.msra.mxu0 %v2410_v1  ;;  %466 = vmatpush.bf16.msra.mxu3 %v2518_v2  ;;  %v3305_v36 = vld [vmem:[#allocation9 + $0x94] sm:$0xf]  ;;  %v2555_v37 = vld [vmem:[#allocation9 + $0x9c] sm:$0xf0]  ;;  %v2574_v38 = vor.u32 %v3310_v30, %v2573_v29  ;;  %v2482_v39 = vor.u32 %v3288_v34, %v2481_v33  ;;  %v3784_v40 = vld [vmem:[#allocation6] sm:$0x1] }
  0x2c   :  { %286 = vmatpush.bf16.msra.mxu2 %v2418_v5  ;;  %v2561_v41 = vld [vmem:[#allocation9 + $0x98] sm:$0xf]  ;;  %v3307_v42 = vld [vmem:[#allocation9 + $0xa0] sm:$0xf0]  ;;  %v2558_v44 = vor.u32 %v3305_v36, %v2555_v37  ;;  %v3302_v45 = vld [vmem:[#allocation9 + $0x7c] sm:$0xf]  ;;  %v301_v47 = vpack.c.bf16 %v3784_v40, %v3784_v40 }
  0x2d   :  { %273 = vmatpush.bf16.msra.mxu1 %v2414_v6  ;;  %v86_v43 = vld [vmem:[#allocation3] sm:$0xf]  ;;  %v2543_v46 = vld [vmem:[#allocation9 + $0x84] sm:$0xf0]  ;;  %v2562_v48 = vor.u32 %v3307_v42, %v2561_v41  ;;  %v2549_v49 = vld [vmem:[#allocation9 + $0x80] sm:$0xf] }
  0x2e   :  { %v3304_v50 = vld [vmem:[#allocation9 + $0x88] sm:$0xf0]  ;;  %v2546_v51 = vor.u32 %v3302_v45, %v2543_v46  ;;  %v3299_v52 = vld [vmem:[#allocation9 + $0x64] sm:$0xf]  ;;  %v2531_v53 = vld [vmem:[#allocation9 + $0x6c] sm:$0xf0] }
  0x2f   :  { %261 = vmatpush.bf16.msra.mxu0 %v2398_v13  ;;  %467 = vmatpush.bf16.msra.mxu3 %v2506_v14  ;;  %v2550_v54 = vor.u32 %v3304_v50, %v2549_v49  ;;  %v2537_v55 = vld [vmem:[#allocation9 + $0x68] sm:$0xf]  ;;  %v3301_v56 = vld [vmem:[#allocation9 + $0x70] sm:$0xf0]  ;;  %v2534_v57 = vor.u32 %v3299_v52, %v2531_v53  ;;  %v3296_v58 = vld [vmem:[#allocation9 + $0x4c] sm:$0xf] }
  0x30   :  { %287 = vmatpush.bf16.msra.mxu2 %v2406_v17  ;;  %v2519_v59 = vld [vmem:[#allocation9 + $0x54] sm:$0xf0]  ;;  %v2538_v60 = vor.u32 %v3301_v56, %v2537_v55  ;;  %v2525_v61 = vld [vmem:[#allocation9 + $0x50] sm:$0xf]  ;;  %v3298_v62 = vld [vmem:[#allocation9 + $0x58] sm:$0xf0] }
  0x31   :  { %274 = vmatpush.bf16.msra.mxu1 %v2402_v18  ;;  %v2522_v63 = vor.u32 %v3296_v58, %v2519_v59  ;;  %v3293_v0 = vld [vmem:[#allocation9 + $0x34] sm:$0xf]  ;;  %v2507_v1 = vld [vmem:[#allocation9 + $0x3c] sm:$0xf0]  ;;  %v2526_v2 = vor.u32 %v3298_v62, %v2525_v61  ;;  %v2513_v3 = vld [vmem:[#allocation9 + $0x38] sm:$0xf] }
  0x32   :  { %v3295_v4 = vld [vmem:[#allocation9 + $0x40] sm:$0xf0]  ;;  %v2510_v5 = vor.u32 %v3293_v0, %v2507_v1  ;;  %v3290_v6 = vld [vmem:[#allocation9 + $0x1c] sm:$0xf]  ;;  %v2495_v7 = vld [vmem:[#allocation9 + $0x24] sm:$0xf0] }
  0x33   :  { %262 = vmatpush.bf16.msra.mxu0 %v2386_v27  ;;  %468 = vmatpush.bf16.msra.mxu3 %v2494_v28  ;;  %v2514_v8 = vor.u32 %v3295_v4, %v2513_v3  ;;  %v2501_v9 = vld [vmem:[#allocation9 + $0x20] sm:$0xf]  ;;  %v3292_v10 = vld [vmem:[#allocation9 + $0x28] sm:$0xf0]  ;;  %v2498_v11 = vor.u32 %v3290_v6, %v2495_v7  ;;  %v3287_v12 = vld [vmem:[#allocation9 + $0x4] sm:$0xf] }
  0x34   :  { %288 = vmatpush.bf16.msra.mxu2 %v2394_v31  ;;  %v2483_v13 = vld [vmem:[#allocation9 + $0xc] sm:$0xf0]  ;;  %v2502_v14 = vor.u32 %v3292_v10, %v2501_v9  ;;  %v2489_v15 = vld [vmem:[#allocation9 + $0x8] sm:$0xf]  ;;  %v3289_v16 = vld [vmem:[#allocation9 + $0x10] sm:$0xf0] }
  0x35   :  { %275 = vmatpush.bf16.msra.mxu1 %v2390_v35  ;;  %v2486_v17 = vor.u32 %v3287_v12, %v2483_v13  ;;  %v2490_v18 = vor.u32 %v3289_v16, %v2489_v15  ;;  %v119_v19 = vld [vmem:[%s3933_s4] sm:$0x7]  ;;  %v2663_v27 = vld [vmem:[#allocation9 + $0xa8] sm:$0xf]  ;;  %v3333_v28 = vld [vmem:[#allocation9 + $0xb0] sm:$0xf0] }
  0x36   :  { %263 = vmatmul.bf16.vlgmr.msra.gmra.mxu0 %v86_v43  ;;  %v121_v20 = vperm.slane %v119_v19, 0  ;;  %v122_v21 = vperm.slane %v119_v19, 1  ;;  %v123_v26 = vperm.slane %v119_v19, 2  ;;  %v2664_v29 = vor.u32 %v3333_v28, %v2663_v27  ;;  %v3332_v30 = vld [vmem:[#allocation9 + $0xac] sm:$0xf]  ;;  %s2355_s27 = sshll.u32 %s3935_s6, 4  ;;  %s2356_s27 = int_to_ptr.hbm [resolvable:$true] %s2355_s27 }
  0x37   :  { %475 = vmatpush.bf16.msrb.mxu0 %v2570_v32  ;;  %289 = vmatmul.bf16.vlgmr.msra.gmra.mxu2 %v86_v43  ;;  %v2665_v31 = vld [vmem:[#allocation9 + $0xb4] sm:$0xf0]  ;;  %v2671_v32 = vld [vmem:[#allocation9 + $0xb0] sm:$0xf]  ;;  %v3334_v34 = vld [vmem:[#allocation9 + $0xb8] sm:$0xf0] }
  0x38   :  { %469 = vmatpush.bf16.msra.mxu3 %v2482_v39  ;;  %276 = vmatmul.bf16.vlgmr.msra.gmra.mxu1 %v86_v43  ;;  %v2668_v33 = vor.u32 %v3332_v30, %v2665_v31  ;;  %v2672_v35 = vor.u32 %v3334_v34, %v2671_v32  ;;  %v2651_v37 = vld [vmem:[#allocation9 + $0x90] sm:$0xf]  ;;  %v3329_v39 = vld [vmem:[#allocation9 + $0x94] sm:$0xf]  ;;  %v2659_v45 = vld [vmem:[#allocation9 + $0x98] sm:$0xf] }
  0x39   :  { %488 = vmatpush.bf16.msrb.mxu1 %v2574_v38  ;;  %718 = vmatpush.bf16.msrb.mxu2 %v2664_v29  ;;  %v3330_v38 = vld [vmem:[#allocation9 + $0x98] sm:$0xf0]  ;;  %v3331_v46 = vld [vmem:[#allocation9 + $0xa0] sm:$0xf0]  ;;  %v2641_v55 = vld [vmem:[#allocation9 + $0x84] sm:$0xf0] }
  0x3a   :  { %v2652_v43 = vor.u32 %v3330_v38, %v2651_v37  ;;  %v3327_v52 = vld [vmem:[#allocation9 + $0x80] sm:$0xf0]  ;;  %v3326_v53 = vld [vmem:[#allocation9 + $0x7c] sm:$0xf]  ;;  %v2647_v56 = vld [vmem:[#allocation9 + $0x80] sm:$0xf] }
  0x3b   :  { %476 = vmatpush.bf16.msrb.mxu0 %v2558_v44  ;;  %470 = vmatmul.bf16.vlgmr.msra.gmra.mxu3 %v301_v47  ;;  %v2653_v44 = vld [vmem:[#allocation9 + $0x9c] sm:$0xf0]  ;;  %v2644_v58 = vor.u32 %v3326_v53, %v2641_v55  ;;  %v3324_v62 = vld [vmem:[#allocation9 + $0x68] sm:$0xf0]  ;;  %v2629_v1 = vld [vmem:[#allocation9 + $0x6c] sm:$0xf0] }
  0x3c   :  { %731 = vmatpush.bf16.msrb.mxu3 %v2668_v33  ;;  %v2627_v61 = vld [vmem:[#allocation9 + $0x60] sm:$0xf]  ;;  %v3325_v3 = vld [vmem:[#allocation9 + $0x70] sm:$0xf0]  ;;  %v2615_v9 = vld [vmem:[#allocation9 + $0x48] sm:$0xf] }
  0x3d   :  { %489 = vmatpush.bf16.msrb.mxu1 %v2562_v48  ;;  %v2660_v48 = vor.u32 %v3331_v46, %v2659_v45  ;;  %719 = vmatpush.bf16.msrb.mxu2 %v2652_v43  ;;  %v2628_v0 = vor.u32 %v3324_v62, %v2627_v61  ;;  %v3321_v10 = vld [vmem:[#allocation9 + $0x50] sm:$0xf0]  ;;  %v2623_v15 = vld [vmem:[#allocation9 + $0x50] sm:$0xf]  ;;  %v2591_v28 = vld [vmem:[#allocation9 + $0x18] sm:$0xf] }
  0x3e   :  { %v2616_v13 = vor.u32 %v3321_v10, %v2615_v9  ;;  %v2603_v19 = vld [vmem:[#allocation9 + $0x30] sm:$0xf]  ;;  %v3315_v29 = vld [vmem:[#allocation9 + $0x20] sm:$0xf0]  ;;  %v3314_v30 = vld [vmem:[#allocation9 + $0x1c] sm:$0xf] }
  0x3f   :  { %477 = vmatpush.bf16.msrb.mxu0 %v2546_v51  ;;  %v2639_v51 = vld [vmem:[#allocation9 + $0x78] sm:$0xf]  ;;  %v2593_v31 = vld [vmem:[#allocation9 + $0x24] sm:$0xf0]  ;;  %v2599_v32 = vld [vmem:[#allocation9 + $0x20] sm:$0xf]  ;;  %v2592_v34 = vor.u32 %v3315_v29, %v2591_v28 }
  0x40   :  { %v3316_v33 = vld [vmem:[#allocation9 + $0x28] sm:$0xf0]  ;;  %v2581_v43 = vld [vmem:[#allocation9 + $0xc] sm:$0xf0]  ;;  %v2587_v46 = vld [vmem:[#allocation9 + $0x8] sm:$0xf] }
  0x41   :  { %490 = vmatpush.bf16.msrb.mxu1 %v2550_v54  ;;  %v2640_v54 = vor.u32 %v3327_v52, %v2639_v51  ;;  %v3312_v37 = vld [vmem:[#allocation9 + $0x8] sm:$0xf0]  ;;  %v3798_v62 = vld [vmem:[%s3934_s5] sm:$0x1]  ;;  %s3731_s28 = smov [#allocation12]   ;;  %s2366_s9 = sshll.u32 %s3936_s7, 4  ;;  %s2367_s9 = int_to_ptr.hbm [resolvable:$true] %s2366_s9 }
  0x42   :  { %v3356_v28 = vld [vmem:[#allocation9 + $0xac] sm:$0xf]  ;;  %s2364_s29 = sshll.u32 %s3731_s28, 4  ;;  %s2365_s29 = int_to_ptr.vmem [resolvable:$true] %s2364_s29 }
  0x43   :  { %478 = vmatpush.bf16.msrb.mxu0 %v2534_v57  ;;  %v3328_v57 = vld [vmem:[#allocation9 + $0x88] sm:$0xf0]  ;;  %720 = vmatpush.bf16.msrb.mxu2 %v2640_v54 }
  0x44   :  { %v2648_v59 = vor.u32 %v3328_v57, %v2647_v56 }
  0x45   :  { %491 = vmatpush.bf16.msrb.mxu1 %v2538_v60 }
  0x47   :  { %479 = vmatpush.bf16.msrb.mxu0 %v2522_v63  ;;  %v3323_v63 = vld [vmem:[#allocation9 + $0x64] sm:$0xf]  ;;  %721 = vmatpush.bf16.msrb.mxu2 %v2628_v0 }
  0x49   :  { %492 = vmatpush.bf16.msrb.mxu1 %v2526_v2  ;;  %v2635_v2 = vld [vmem:[#allocation9 + $0x68] sm:$0xf] }
  0x4a   :  { %v2636_v6 = vor.u32 %v3325_v3, %v2635_v2 }
  0x4b   :  { %480 = vmatpush.bf16.msrb.mxu0 %v2510_v5  ;;  %v2632_v5 = vor.u32 %v3323_v63, %v2629_v1  ;;  %722 = vmatpush.bf16.msrb.mxu2 %v2616_v13 }
  0x4d   :  { %493 = vmatpush.bf16.msrb.mxu1 %v2514_v8 }
  0x4f   :  { %481 = vmatpush.bf16.msrb.mxu0 %v2498_v11  ;;  %v3320_v11 = vld [vmem:[#allocation9 + $0x4c] sm:$0xf] }
  0x51   :  { %494 = vmatpush.bf16.msrb.mxu1 %v2502_v14  ;;  %v2617_v14 = vld [vmem:[#allocation9 + $0x54] sm:$0xf0] }
  0x52   :  { %v2620_v16 = vor.u32 %v3320_v11, %v2617_v14 }
  0x53   :  { %482 = vmatpush.bf16.msrb.mxu0 %v2486_v17  ;;  %v3322_v17 = vld [vmem:[#allocation9 + $0x58] sm:$0xf0] }
  0x55   :  { %495 = vmatpush.bf16.msrb.mxu1 %v2490_v18  ;;  %v2624_v18 = vor.u32 %v3322_v17, %v2623_v15 }
  0x56   :  { %483 = vmatmul.bf16.vlgmr.msrb.gmra.mxu0 %v301_v47 }
  0x57   :  { %744 = vmatpush.bf16.msra.mxu0 %v2672_v35  ;;  %v2596_v35 = vor.u32 %v3314_v30, %v2593_v31  ;;  %v2763_v30 = vld [vmem:[#allocation9 + $0xb4] sm:$0xf0]  ;;  %v2769_v31 = vld [vmem:[#allocation9 + $0xb0] sm:$0xf] }
  0x58   :  { %496 = vmatmul.bf16.vlgmr.msrb.gmra.mxu1 %v301_v47  ;;  %v2656_v47 = vor.u32 %v3329_v39, %v2653_v44 }
  0x5a   :  { %732 = vmatpush.bf16.msrb.mxu3 %v2656_v47  ;;  %v3313_v47 = vld [vmem:[#allocation9 + $0x10] sm:$0xf0] }
  0x5b   :  { %745 = vmatpush.bf16.msra.mxu0 %v2660_v48  ;;  %v3729_v48 = vmov 0.0   ;;  %v2588_v54 = vor.u32 %v3313_v47, %v2587_v46  ;;  %v3350_v46 = vld [vmem:[#allocation9 + $0x7c] sm:$0xf] }
  0x5c   :  { %297 = vst [vmem:[#allocation11] sm:$0xff] %v3729_v48  ;;  %v2739_v48 = vld [vmem:[#allocation9 + $0x84] sm:$0xf0] }
  0x5e   :  { %733 = vmatpush.bf16.msrb.mxu3 %v2644_v58 }
  0x5f   :  { %746 = vmatpush.bf16.msra.mxu0 %v2648_v59 }
  0x62   :  { %734 = vmatpush.bf16.msrb.mxu3 %v2632_v5 }
  0x63   :  { %747 = vmatpush.bf16.msra.mxu0 %v2636_v6 }
  0x66   :  { %735 = vmatpush.bf16.msrb.mxu3 %v2620_v16 }
  0x67   :  { %748 = vmatpush.bf16.msra.mxu0 %v2624_v18 }
  0xb3   :  { %v264_v22 = vpop.f32.mrf.mxu0 }
  0xb4   :  { %v265_v23 = vadd.f32 %v264_v22, %v121_v20  ;;  %v3318_v20 = vld [vmem:[#allocation9 + $0x38] sm:$0xf0] }
  0xb5   :  { %v277_v24 = vpop.f32.mrf.mxu1  ;;  %v2604_v22 = vor.u32 %v3318_v20, %v2603_v19 }
  0xb6   :  { %294 = vst [vmem:[#allocation2] sm:$0xff] %v265_v23  ;;  %v278_v25 = vadd.f32 %v277_v24, %v122_v21  ;;  %v3317_v21 = vld [vmem:[#allocation9 + $0x34] sm:$0xf]  ;;  %v2605_v23 = vld [vmem:[#allocation9 + $0x3c] sm:$0xf0] }
  0xb7   :  { %v2611_v24 = vld [vmem:[#allocation9 + $0x38] sm:$0xf]  ;;  %723 = vmatpush.bf16.msrb.mxu2 %v2604_v22 }
  0xb8   :  { %295 = vst [vmem:[#allocation2 + $0x8] sm:$0xff] %v278_v25  ;;  %v3319_v25 = vld [vmem:[#allocation9 + $0x40] sm:$0xf0] }
  0xb9   :  { %v2612_v27 = vor.u32 %v3319_v25, %v2611_v24 }
  0xba   :  { %v290_v36 = vpop.f32.mrf.mxu2 }
  0xbb   :  { %v291_v41 = vadd.f32 %v290_v36, %v123_v26  ;;  %v266_v42 = vpop.f32.mrf.mxu0  ;;  %v2608_v26 = vor.u32 %v3317_v21, %v2605_v23  ;;  %v2579_v36 = vld [vmem:[#allocation9] sm:$0xf]  ;;  %749 = vmatpush.bf16.msra.mxu0 %v2612_v27  ;;  %724 = vmatpush.bf16.msrb.mxu2 %v2592_v34  ;;  %v3357_v27 = vld [vmem:[#allocation9 + $0xb0] sm:$0xf0] }
  0xbc   :  { %v3311_v42 = vld [vmem:[#allocation9 + $0x4] sm:$0xf] }
  0xbd   :  { %296 = vst [vmem:[#allocation2 + $0x10] sm:$0xff] %v291_v41  ;;  %v279_v49 = vpop.f32.mrf.mxu1  ;;  %736 = vmatpush.bf16.msrb.mxu3 %v2608_v26  ;;  %v2600_v41 = vor.u32 %v3316_v33, %v2599_v32  ;;  %v2584_v52 = vor.u32 %v3311_v42, %v2581_v43  ;;  %v2761_v26 = vld [vmem:[#allocation9 + $0xa8] sm:$0xf]  ;;  %v3358_v32 = vld [vmem:[#allocation9 + $0xb8] sm:$0xf0]  ;;  %v2766_v33 = vor.u32 %v3356_v28, %v2763_v30 }
  0xbe   :  { %v471_v50 = vpop.f32.mrf.mxu3  ;;  %v2762_v29 = vor.u32 %v3357_v27, %v2761_v26  ;;  %v2770_v34 = vor.u32 %v3358_v32, %v2769_v31  ;;  %v3343_v26 = vld [vmem:[#allocation9 + $0x40] sm:$0xf0]  ;;  %v2689_v27 = vld [vmem:[#allocation9 + $0x18] sm:$0xf]  ;;  %v3338_v30 = vld [vmem:[#allocation9 + $0x1c] sm:$0xf] }
  0xbf   :  { %750 = vmatpush.bf16.msra.mxu0 %v2600_v41  ;;  %v3355_v41 = vld [vmem:[#allocation9 + $0xa0] sm:$0xf0]  ;;  %v2691_v31 = vld [vmem:[#allocation9 + $0x24] sm:$0xf0] }
  0xc0   :  { %974 = vmatpush.bf16.msra.mxu1 %v2762_v29  ;;  %v3339_v29 = vld [vmem:[#allocation9 + $0x20] sm:$0xf0] }
  0xc1   :  { %737 = vmatpush.bf16.msrb.mxu3 %v2596_v35  ;;  %v3354_v35 = vld [vmem:[#allocation9 + $0x98] sm:$0xf0]  ;;  %v2690_v32 = vor.u32 %v3339_v29, %v2689_v27 }
  0xc2   :  { %v292_v60 = vpop.f32.mrf.mxu2  ;;  %v3378_v29 = vld [vmem:[#allocation9 + $0x98] sm:$0xf0] }
  0xc3   :  { %751 = vmatpush.bf16.msra.mxu0 %v2588_v54 }
  0xc4   :  { %v3791_v4 = vld [vmem:[#allocation2] ss:$8 sm:$0x7] }
  0xc5   :  { %v501_v7 = vadd.f32 %v471_v50, %v3791_v4  ;;  %v522_v39 = vrot.slane %v3791_v4, 1  ;;  %v2580_v50 = vor.u32 %v3312_v37, %v2579_v36  ;;  %738 = vmatpush.bf16.msrb.mxu3 %v2584_v52  ;;  %v546_v10 = vrot.slane %v3791_v4, 2  ;;  %v3353_v36 = vld [vmem:[#allocation9 + $0x94] sm:$0xf] }
  0xc6   :  { %v473_v8 = vpop.f32.mrf.mxu3 }
  0xc7   :  { %v2575_v12 = vmul.f32 -1.442695, %v501_v7  ;;  %725 = vmatpush.bf16.msrb.mxu2 %v2580_v50  ;;  %v3352_v50 = vld [vmem:[#allocation9 + $0x88] sm:$0xf0] }
  0xc9   :  { %3488 = vpow2.f32 %v2575_v12  ;;  %1000 = vmatpush.bf16.msra.mxu3 %v2770_v34  ;;  %v2697_v34 = vld [vmem:[#allocation9 + $0x20] sm:$0xf] }
  0xcb   :  { %987 = vmatpush.bf16.msra.mxu2 %v2766_v33  ;;  %v2694_v33 = vor.u32 %v3338_v30, %v2691_v31  ;;  %v3377_v30 = vld [vmem:[#allocation9 + $0x94] sm:$0xf] }
  0xcf   :  { %v3489_v38 = vpop.eup %3488 }
  0xd0   :  { %v505_v44 = vadd.f32 1.0, %v3489_v38  ;;  %v2751_v38 = vld [vmem:[#allocation9 + $0x9c] sm:$0xf0] }
  0xd1   :  { %v2754_v42 = vor.u32 %v3353_v36, %v2751_v38 }
  0xd2   :  { %3490 = vrcp.f32 %v505_v44  ;;  %v517_v63 = vand.u32 2147483648, %v505_v44  ;;  %v515_v1 = vand.u32 2147483647, %v505_v44  ;;  %vm511_vm1 = vweird.f32 %v505_v44 }
  0xd3   :  { %v484_v45 = vpop.f32.mrf.mxu0  ;;  %988 = vmatpush.bf16.msra.mxu2 %v2754_v42  ;;  %v2679_v42 = vld [vmem:[#allocation9 + $0xc] sm:$0xf0] }
  0xd4   :  { %v524_v49 = vadd.f32 %v522_v39, %v484_v45  ;;  %v518_v5 = vor.u32 1.1754944e-38, %v517_v63  ;;  %vm516_vm3 = vcmp.eq.f32.partialorder %v515_v1, 8.507059e+37  ;;  %v2757_v39 = vld [vmem:[#allocation9 + $0x98] sm:$0xf]  ;;  %v3351_v45 = vld [vmem:[#allocation9 + $0x80] sm:$0xf0] }
  0xd5   :  { %v497_v51 = vpop.f32.mrf.mxu1  ;;  %v2758_v43 = vor.u32 %v3355_v41, %v2757_v39  ;;  %v3336_v39 = vld [vmem:[#allocation9 + $0x8] sm:$0xf0]  ;;  %v3335_v41 = vld [vmem:[#allocation9 + $0x4] sm:$0xf] }
  0xd6   :  { %v2576_v53 = vmul.f32 -1.442695, %v524_v49  ;;  %v544_v3 = vadd.f32 %v497_v51, %v3798_v62  ;;  %v2745_v49 = vld [vmem:[#allocation9 + $0x80] sm:$0xf]  ;;  %v2742_v51 = vor.u32 %v3350_v46, %v2739_v48 }
  0xd7   :  { %1001 = vmatpush.bf16.msra.mxu3 %v2758_v43  ;;  %v2746_v52 = vor.u32 %v3352_v50, %v2745_v49  ;;  %v2685_v43 = vld [vmem:[#allocation9 + $0x8] sm:$0xf] }
  0xd8   :  { %3492 = vpow2.f32 %v2576_v53  ;;  %v3491_v55 = vpop.eup %3490  ;;  %v3808_v53 = vld [vmem:[#allocation2 + $0x1] ss:$8 sm:$0x7]  ;;  %989 = vmatpush.bf16.msra.mxu2 %v2742_v51 }
  0xd9   :  { %v507_v57 = vmul.f32 %v3491_v55, %v505_v44  ;;  %vm512_vm0 = vweird.f32 %v3491_v55  ;;  %v2737_v44 = vld [vmem:[#allocation9 + $0x78] sm:$0xf]  ;;  %v778_v1 = vrot.slane %v3808_v53, 1 }
  0xda   :  { %vm513_vm2 = vmor %vm511_vm1, %vm512_vm0  ;;  %v2738_v47 = vor.u32 %v3351_v45, %v2737_v44  ;;  %v3337_v44 = vld [vmem:[#allocation9 + $0x10] sm:$0xf0] }
  0xdb   :  { %v486_v56 = vpop.f32.mrf.mxu0  ;;  %v508_v60 = vsub.f32 1.0, %v507_v57  ;;  %1002 = vmatpush.bf16.msra.mxu3 %v2746_v52  ;;  %v3347_v57 = vld [vmem:[#allocation9 + $0x64] sm:$0xf]  ;;  %v2686_v50 = vor.u32 %v3337_v44, %v2685_v43  ;;  %v3376_v43 = vld [vmem:[#allocation9 + $0x88] sm:$0xf0] }
  0xdc   :  { %v3348_v56 = vld [vmem:[#allocation9 + $0x68] sm:$0xf0] }
  0xdd   :  { %v499_v58 = vpop.f32.mrf.mxu1  ;;  %v509_v0 = vmul.f32 %v3491_v55, %v508_v60  ;;  %v2733_v60 = vld [vmem:[#allocation9 + $0x68] sm:$0xf] }
  0xde   :  { %v3493_v59 = vpop.eup %3492 }
  0xdf   :  { %v528_v61 = vadd.f32 1.0, %v3493_v59  ;;  %v510_v2 = vadd.f32 %v3491_v55, %v509_v0  ;;  %v2727_v59 = vld [vmem:[#allocation9 + $0x6c] sm:$0xf0] }
  0xe0   :  { %v2730_v63 = vor.u32 %v3347_v57, %v2727_v59 }
  0xe1   :  { %3494 = vrcp.f32 %v528_v61  ;;  %v514_v6 = vsel %vm513_vm2, %v3491_v55, %v510_v2  ;;  %v540_v14 = vand.u32 2147483648, %v528_v61  ;;  %v538_v16 = vand.u32 2147483647, %v528_v61  ;;  %v2725_v55 = vld [vmem:[#allocation9 + $0x60] sm:$0xf] }
  0xe2   :  { %v519_v7 = vsel %vm516_vm3, %v518_v5, %v514_v6  ;;  %vm534_vm5 = vweird.f32 %v528_v61  ;;  %v2726_v58 = vor.u32 %v3348_v56, %v2725_v55  ;;  %990 = vmatpush.bf16.msra.mxu2 %v2730_v63  ;;  %v2713_v2 = vld [vmem:[#allocation9 + $0x48] sm:$0xf]  ;;  %v3344_v5 = vld [vmem:[#allocation9 + $0x4c] sm:$0xf] }
  0xe3   :  { %v545_v8 = vmul.f32 %v544_v3, %v519_v7  ;;  %v541_v18 = vor.u32 1.1754944e-38, %v540_v14  ;;  %vm539_vm7 = vcmp.eq.f32.partialorder %v538_v16, 8.507059e+37  ;;  %v3345_v3 = vld [vmem:[#allocation9 + $0x50] sm:$0xf0] }
  0xe5   :  { %v548_v12 = vadd.f32 %v546_v10, %v545_v8  ;;  %v2714_v8 = vor.u32 %v3345_v3, %v2713_v2  ;;  %v2721_v10 = vld [vmem:[#allocation9 + $0x50] sm:$0xf] }
  0xe7   :  { %v3495_v9 = vpop.eup %3494  ;;  %3496 = vtanh.f32 %v548_v12 }
  0xe8   :  { %v530_v11 = vmul.f32 %v3495_v9, %v528_v61  ;;  %vm535_vm4 = vweird.f32 %v3495_v9  ;;  %v3349_v61 = vld [vmem:[#allocation9 + $0x70] sm:$0xf0] }
  0xe9   :  { %vm536_vm6 = vmor %vm534_vm5, %vm535_vm4  ;;  %v2734_v0 = vor.u32 %v3349_v61, %v2733_v60 }
  0xea   :  { %v531_v13 = vsub.f32 1.0, %v530_v11  ;;  %v3346_v11 = vld [vmem:[#allocation9 + $0x58] sm:$0xf0] }
  0xeb   :  { %1003 = vmatpush.bf16.msra.mxu3 %v2734_v0 }
  0xec   :  { %v532_v15 = vmul.f32 %v3495_v9, %v531_v13 }
  0xed   :  { %v3497_v22 = vpop.eup %3496 }
  0xee   :  { %v533_v17 = vadd.f32 %v3495_v9, %v532_v15  ;;  %v2722_v15 = vor.u32 %v3346_v11, %v2721_v10 }
  0xf0   :  { %v537_v19 = vsel %vm536_vm6, %v3495_v9, %v533_v17  ;;  %v2715_v9 = vld [vmem:[#allocation9 + $0x54] sm:$0xf0]  ;;  %1004 = vmatpush.bf16.msra.mxu3 %v2722_v15 }
  0xf1   :  { %v542_v20 = vsel %vm539_vm7, %v541_v18, %v537_v19  ;;  %v2718_v14 = vor.u32 %v3344_v5, %v2715_v9  ;;  %v2701_v19 = vld [vmem:[#allocation9 + $0x30] sm:$0xf]  ;;  %v802_v9 = vrot.slane %v3808_v53, 2 }
  0xf2   :  { %v550_v21 = vsub.f32 1.0, %v542_v20  ;;  %v552_v4 = vmul.f32 %v542_v20, %v3784_v40  ;;  %v2749_v40 = vld [vmem:[#allocation9 + $0x90] sm:$0xf]  ;;  %v3342_v20 = vld [vmem:[#allocation9 + $0x38] sm:$0xf0] }
  0xf3   :  { %v2750_v37 = vor.u32 %v3354_v35, %v2749_v40  ;;  %991 = vmatpush.bf16.msra.mxu2 %v2718_v14  ;;  %v3340_v40 = vld [vmem:[#allocation9 + $0x28] sm:$0xf0]  ;;  %v2677_v35 = vld [vmem:[#allocation9] sm:$0xf] }
  0xf4   :  { %v551_v23 = vmul.f32 %v3497_v22, %v550_v21  ;;  %v3341_v21 = vld [vmem:[#allocation9 + $0x34] sm:$0xf]  ;;  %v2703_v22 = vld [vmem:[#allocation9 + $0x3c] sm:$0xf0]  ;;  %v2698_v38 = vor.u32 %v3340_v40, %v2697_v34  ;;  %v2678_v46 = vor.u32 %v3336_v39, %v2677_v35  ;;  %v3379_v34 = vld [vmem:[#allocation9 + $0xa0] sm:$0xf0] }
  0xf5   :  { %975 = vmatpush.bf16.msra.mxu1 %v2750_v37 }
  0xf6   :  { %v3803_v24 = vadd.f32 %v552_v4, %v551_v23  ;;  %v2702_v23 = vor.u32 %v3342_v20, %v2701_v19  ;;  %v2706_v4 = vor.u32 %v3341_v21, %v2703_v22  ;;  %v2859_v20 = vld [vmem:[#allocation9 + $0xa8] sm:$0xf]  ;;  %v3381_v21 = vld [vmem:[#allocation9 + $0xb0] sm:$0xf0]  ;;  %v3380_v22 = vld [vmem:[#allocation9 + $0xac] sm:$0xf] }
  0xf8   :  { %554 = vst [vmem:[#allocation11] sm:$0x1] %v3803_v24  ;;  %v557_v25 = vpack.c.bf16 %v3803_v24, %v3803_v24  ;;  %992 = vmatpush.bf16.msra.mxu2 %v2706_v4  ;;  %v2861_v4 = vld [vmem:[#allocation9 + $0xb4] sm:$0xf0] }
  0xf9   :  { %976 = vmatpush.bf16.msra.mxu1 %v2738_v47  ;;  %v2682_v47 = vor.u32 %v3335_v41, %v2679_v42  ;;  %v2864_v27 = vor.u32 %v3380_v22, %v2861_v4  ;;  %v2837_v41 = vld [vmem:[#allocation9 + $0x84] sm:$0xf0]  ;;  %v2843_v42 = vld [vmem:[#allocation9 + $0x80] sm:$0xf]  ;;  %v3362_v22 = vld [vmem:[#allocation9 + $0x1c] sm:$0xf] }
  0xfa   :  { %726 = vmatmul.bf16.vlgmr.msrb.gmra.mxu2 %v557_v25  ;;  %739 = vmatmul.bf16.vlgmr.msrb.gmra.mxu3 %v557_v25 }
  0xfb   :  { %752 = vmatmul.bf16.vlgmr.msra.gmra.mxu0 %v557_v25  ;;  %v2709_v25 = vld [vmem:[#allocation9 + $0x38] sm:$0xf] }
  0xfc   :  { %v2710_v28 = vor.u32 %v3343_v26, %v2709_v25  ;;  %993 = vmatpush.bf16.msra.mxu2 %v2694_v33  ;;  %v2867_v25 = vld [vmem:[#allocation9 + $0xb0] sm:$0xf]  ;;  %v3382_v26 = vld [vmem:[#allocation9 + $0xb8] sm:$0xf0]  ;;  %v2855_v33 = vld [vmem:[#allocation9 + $0x98] sm:$0xf] }
  0xfd   :  { %977 = vmatpush.bf16.msra.mxu1 %v2726_v58  ;;  %v2856_v35 = vor.u32 %v3379_v34, %v2855_v33 }
  0xfe   :  { %1005 = vmatpush.bf16.msra.mxu3 %v2710_v28  ;;  %v2868_v28 = vor.u32 %v3382_v26, %v2867_v25  ;;  %v2789_v25 = vld [vmem:[#allocation9 + $0x24] sm:$0xf0]  ;;  %v2795_v26 = vld [vmem:[#allocation9 + $0x20] sm:$0xf] }
 0x100   :  { %994 = vmatpush.bf16.msra.mxu2 %v2682_v47  ;;  %v3372_v47 = vld [vmem:[#allocation9 + $0x68] sm:$0xf0] }
 0x101   :  { %978 = vmatpush.bf16.msra.mxu1 %v2714_v8 }
 0x102   :  { %1006 = vmatpush.bf16.msra.mxu3 %v2698_v38  ;;  %v3374_v38 = vld [vmem:[#allocation9 + $0x7c] sm:$0xf] }
 0x103   :  { %v2840_v44 = vor.u32 %v3374_v38, %v2837_v41 }
 0x104   :  { %1256 = vmatpush.bf16.msrb.mxu2 %v2868_v28 }
 0x105   :  { %979 = vmatpush.bf16.msra.mxu1 %v2702_v23  ;;  %v2860_v23 = vor.u32 %v3381_v21, %v2859_v20  ;;  %v2787_v20 = vld [vmem:[#allocation9 + $0x18] sm:$0xf]  ;;  %v3363_v21 = vld [vmem:[#allocation9 + $0x20] sm:$0xf0] }
 0x106   :  { %1007 = vmatpush.bf16.msra.mxu3 %v2686_v50  ;;  %v2825_v50 = vld [vmem:[#allocation9 + $0x6c] sm:$0xf0]  ;;  %v2788_v4 = vor.u32 %v3363_v21, %v2787_v20  ;;  %v3406_v20 = vld [vmem:[#allocation9 + $0xb8] sm:$0xf0] }
 0x107   :  { %1230 = vmatpush.bf16.msrb.mxu0 %v2860_v23 }
 0x108   :  { %1257 = vmatpush.bf16.msrb.mxu2 %v2856_v35  ;;  %v2783_v35 = vld [vmem:[#allocation9 + $0x8] sm:$0xf] }
 0x109   :  { %980 = vmatpush.bf16.msra.mxu1 %v2690_v32  ;;  %v2849_v32 = vld [vmem:[#allocation9 + $0x9c] sm:$0xf0] }
 0x10a   :  { %v2852_v40 = vor.u32 %v3377_v30, %v2849_v32  ;;  %v2775_v30 = vld [vmem:[#allocation9] sm:$0xf]  ;;  %v3359_v32 = vld [vmem:[#allocation9 + $0x4] sm:$0xf] }
 0x10d   :  { %981 = vmatpush.bf16.msra.mxu1 %v2678_v46  ;;  %v2823_v46 = vld [vmem:[#allocation9 + $0x60] sm:$0xf] }
 0x111   :  { %1243 = vmatpush.bf16.msrb.mxu1 %v2864_v27  ;;  %v3364_v27 = vld [vmem:[#allocation9 + $0x28] sm:$0xf0] }
 0x115   :  { %1244 = vmatpush.bf16.msrb.mxu1 %v2852_v40  ;;  %v2777_v40 = vld [vmem:[#allocation9 + $0xc] sm:$0xf0] }
 0x116   :  { %v2780_v38 = vor.u32 %v3359_v32, %v2777_v40  ;;  %v2933_v32 = vld [vmem:[#allocation9 + $0x78] sm:$0xf] }
 0x119   :  { %1245 = vmatpush.bf16.msrb.mxu1 %v2840_v44 }
 0x178   :  { %v3810_v54 = vpop.f32.mrf.mxu0 }
 0x179   :  { %v800_v3 = vadd.f32 %v3810_v54, %v3798_v62 }
 0x17d   :  { %v727_v6 = vpop.f32.mrf.mxu2  ;;  %v740_v7 = vpop.f32.mrf.mxu3 }
 0x17e   :  { %v757_v12 = vadd.f32 %v727_v6, %v3808_v53  ;;  %v780_v13 = vadd.f32 %v778_v1, %v740_v7 }
 0x180   :  { %v2673_v16 = vmul.f32 -1.442695, %v757_v12  ;;  %v2674_v17 = vmul.f32 -1.442695, %v780_v13  ;;  %v755_v18 = vpop.f32.mrf.mxu0 }
 0x182   :  { %3498 = vpow2.f32 %v2673_v16 }
 0x183   :  { %3500 = vpow2.f32 %v2674_v17 }
 0x185   :  { %v729_v36 = vpop.f32.mrf.mxu2  ;;  %v742_v37 = vpop.f32.mrf.mxu3 }
 0x186   :  { %v2835_v36 = vld [vmem:[#allocation9 + $0x78] sm:$0xf]  ;;  %v3375_v37 = vld [vmem:[#allocation9 + $0x80] sm:$0xf0] }
 0x187   :  { %v2836_v39 = vor.u32 %v3375_v37, %v2835_v36  ;;  %v3361_v36 = vld [vmem:[#allocation9 + $0x10] sm:$0xf0] }
 0x188   :  { %v3499_v45 = vpop.eup %3498 }
 0x189   :  { %v3501_v48 = vpop.eup %3500  ;;  %v761_v49 = vadd.f32 1.0, %v3499_v45  ;;  %v2844_v45 = vor.u32 %v3376_v43, %v2843_v42 }
 0x18a   :  { %v784_v51 = vadd.f32 1.0, %v3501_v48  ;;  %v3371_v48 = vld [vmem:[#allocation9 + $0x64] sm:$0xf] }
 0x18b   :  { %3502 = vrcp.f32 %v761_v49  ;;  %v773_v59 = vand.u32 2147483648, %v761_v49  ;;  %v771_v63 = vand.u32 2147483647, %v761_v49  ;;  %vm767_vm9 = vweird.f32 %v761_v49  ;;  %1258 = vmatpush.bf16.msrb.mxu2 %v2844_v45 }
 0x18c   :  { %3504 = vrcp.f32 %v784_v51  ;;  %v796_v10 = vand.u32 2147483648, %v784_v51  ;;  %vm790_vm13 = vweird.f32 %v784_v51  ;;  %v794_v11 = vand.u32 2147483647, %v784_v51 }
 0x18d   :  { %v774_v2 = vor.u32 1.1754944e-38, %v773_v59  ;;  %vm772_vm11 = vcmp.eq.f32.partialorder %v771_v63, 8.507059e+37  ;;  %v3369_v59 = vld [vmem:[#allocation9 + $0x50] sm:$0xf0] }
 0x18e   :  { %v797_v14 = vor.u32 1.1754944e-38, %v796_v10  ;;  %vm795_vm15 = vcmp.eq.f32.partialorder %v794_v11, 8.507059e+37  ;;  %v3365_v11 = vld [vmem:[#allocation9 + $0x34] sm:$0xf] }
 0x191   :  { %v3503_v52 = vpop.eup %3502 }
 0x192   :  { %v3505_v55 = vpop.eup %3504  ;;  %v763_v56 = vmul.f32 %v3503_v52, %v761_v49  ;;  %vm768_vm8 = vweird.f32 %v3503_v52  ;;  %v2824_v49 = vor.u32 %v3372_v47, %v2823_v46 }
 0x193   :  { %v786_v57 = vmul.f32 %v3505_v55, %v784_v51  ;;  %vm769_vm10 = vmor %vm767_vm9, %vm768_vm8  ;;  %vm791_vm12 = vweird.f32 %v3505_v55  ;;  %v2831_v51 = vld [vmem:[#allocation9 + $0x68] sm:$0xf] }
 0x194   :  { %v764_v58 = vsub.f32 1.0, %v763_v56  ;;  %vm792_vm14 = vmor %vm790_vm13, %vm791_vm12 }
 0x195   :  { %v787_v60 = vsub.f32 1.0, %v786_v57  ;;  %v3823_v57 = vld [vmem:[#allocation2 + $0x2] ss:$8 sm:$0x7] }
 0x196   :  { %v765_v61 = vmul.f32 %v3503_v52, %v764_v58  ;;  %v2811_v58 = vld [vmem:[#allocation9 + $0x48] sm:$0xf] }
 0x197   :  { %v788_v0 = vmul.f32 %v3505_v55, %v787_v60  ;;  %v3368_v60 = vld [vmem:[#allocation9 + $0x4c] sm:$0xf]  ;;  %v2812_v63 = vor.u32 %v3369_v59, %v2811_v58 }
 0x198   :  { %v766_v1 = vadd.f32 %v3503_v52, %v765_v61 }
 0x199   :  { %v789_v7 = vadd.f32 %v3505_v55, %v788_v0  ;;  %v2813_v0 = vld [vmem:[#allocation9 + $0x54] sm:$0xf0] }
 0x19a   :  { %v770_v5 = vsel %vm769_vm10, %v3503_v52, %v766_v1  ;;  %v3373_v52 = vld [vmem:[#allocation9 + $0x70] sm:$0xf0]  ;;  %v2819_v1 = vld [vmem:[#allocation9 + $0x50] sm:$0xf] }
 0x19b   :  { %v775_v6 = vsel %vm772_vm11, %v774_v2, %v770_v5  ;;  %v793_v13 = vsel %vm792_vm14, %v3505_v55, %v789_v7  ;;  %v2828_v55 = vor.u32 %v3371_v48, %v2825_v50  ;;  %v2832_v56 = vor.u32 %v3373_v52, %v2831_v51  ;;  %v3370_v2 = vld [vmem:[#allocation9 + $0x58] sm:$0xf0] }
 0x19c   :  { %v801_v8 = vmul.f32 %v800_v3, %v775_v6  ;;  %v798_v15 = vsel %vm795_vm15, %v797_v14, %v793_v13  ;;  %v2816_v5 = vor.u32 %v3368_v60, %v2813_v0  ;;  %v2820_v6 = vor.u32 %v3370_v2, %v2819_v1  ;;  %v2807_v13 = vld [vmem:[#allocation9 + $0x38] sm:$0xf] }
 0x19d   :  { %v806_v16 = vsub.f32 1.0, %v798_v15  ;;  %v808_v18 = vmul.f32 %v798_v15, %v3803_v24  ;;  %v2847_v24 = vld [vmem:[#allocation9 + $0x90] sm:$0xf]  ;;  %1246 = vmatpush.bf16.msrb.mxu1 %v2828_v55  ;;  %1259 = vmatpush.bf16.msrb.mxu2 %v2832_v56  ;;  %v1034_v14 = vrot.slane %v3823_v57, 1 }
 0x19e   :  { %v804_v12 = vadd.f32 %v802_v9, %v801_v8  ;;  %v2848_v31 = vor.u32 %v3378_v29, %v2847_v24  ;;  %v2799_v8 = vld [vmem:[#allocation9 + $0x30] sm:$0xf]  ;;  %v3366_v9 = vld [vmem:[#allocation9 + $0x38] sm:$0xf0]  ;;  %v2792_v24 = vor.u32 %v3362_v22, %v2789_v25  ;;  %v2796_v29 = vor.u32 %v3364_v27, %v2795_v26  ;;  %v3401_v25 = vld [vmem:[#allocation9 + $0x94] sm:$0xf] }
 0x19f   :  { %v2800_v10 = vor.u32 %v3366_v9, %v2799_v8  ;;  %v2947_v27 = vld [vmem:[#allocation9 + $0x9c] sm:$0xf0] }
 0x1a0   :  { %3506 = vtanh.f32 %v804_v12  ;;  %1231 = vmatpush.bf16.msrb.mxu0 %v2848_v31  ;;  %v2801_v12 = vld [vmem:[#allocation9 + $0x3c] sm:$0xf0]  ;;  %v3360_v31 = vld [vmem:[#allocation9 + $0x8] sm:$0xf0] }
 0x1a1   :  { %1247 = vmatpush.bf16.msrb.mxu1 %v2816_v5  ;;  %1260 = vmatpush.bf16.msrb.mxu2 %v2820_v6  ;;  %v2804_v15 = vor.u32 %v3365_v11, %v2801_v12  ;;  %v2776_v34 = vor.u32 %v3360_v31, %v2775_v30 }
 0x1a4   :  { %1232 = vmatpush.bf16.msrb.mxu0 %v2836_v39  ;;  %v2784_v39 = vor.u32 %v3361_v36, %v2783_v35  ;;  %v2935_v35 = vld [vmem:[#allocation9 + $0x84] sm:$0xf0]  ;;  %v2941_v36 = vld [vmem:[#allocation9 + $0x80] sm:$0xf] }
 0x1a5   :  { %1248 = vmatpush.bf16.msrb.mxu1 %v2804_v15  ;;  %v2957_v15 = vld [vmem:[#allocation9 + $0xa8] sm:$0xf] }
 0x1a6   :  { %v3507_v54 = vpop.eup %3506 }
 0x1a7   :  { %v807_v17 = vmul.f32 %v3507_v54, %v806_v16  ;;  %v3367_v16 = vld [vmem:[#allocation9 + $0x40] sm:$0xf0] }
 0x1a8   :  { %1233 = vmatpush.bf16.msrb.mxu0 %v2824_v49 }
 0x1a9   :  { %v3818_v19 = vadd.f32 %v808_v18, %v807_v17  ;;  %v2808_v17 = vor.u32 %v3367_v16, %v2807_v13  ;;  %1249 = vmatpush.bf16.msrb.mxu1 %v2792_v24  ;;  %v3405_v16 = vld [vmem:[#allocation9 + $0xb0] sm:$0xf0]  ;;  %v3403_v24 = vld [vmem:[#allocation9 + $0xa0] sm:$0xf0] }
 0x1ab   :  { %810 = vst [vmem:[#allocation11 + $0x1] sm:$0x1] %v3818_v19  ;;  %v813_v53 = vpack.c.bf16 %v3818_v19, %v3818_v19  ;;  %1261 = vmatpush.bf16.msrb.mxu2 %v2808_v17  ;;  %v2958_v17 = vor.u32 %v3405_v16, %v2957_v15  ;;  %v2905_v15 = vld [vmem:[#allocation9 + $0x38] sm:$0xf]  ;;  %v3391_v16 = vld [vmem:[#allocation9 + $0x40] sm:$0xf0] }
 0x1ac   :  { %1234 = vmatpush.bf16.msrb.mxu0 %v2812_v63 }
 0x1ad   :  { %982 = vmatmul.bf16.vlgmr.msra.gmra.mxu1 %v813_v53  ;;  %995 = vmatmul.bf16.vlgmr.msra.gmra.mxu2 %v813_v53 }
 0x1ae   :  { %1008 = vmatmul.bf16.vlgmr.msra.gmra.mxu3 %v813_v53  ;;  %1250 = vmatpush.bf16.msrb.mxu1 %v2780_v38 }
 0x1af   :  { %1262 = vmatpush.bf16.msrb.mxu2 %v2796_v29  ;;  %1486 = vmatpush.bf16.msrb.mxu3 %v2958_v17  ;;  %v2950_v29 = vor.u32 %v3401_v25, %v2947_v27  ;;  %v2887_v25 = vld [vmem:[#allocation9 + $0x24] sm:$0xf0] }
 0x1b0   :  { %1235 = vmatpush.bf16.msrb.mxu0 %v2800_v10 }
 0x1b3   :  { %1263 = vmatpush.bf16.msrb.mxu2 %v2784_v39 }
 0x1b4   :  { %1236 = vmatpush.bf16.msrb.mxu0 %v2788_v4  ;;  %v3402_v4 = vld [vmem:[#allocation9 + $0x98] sm:$0xf0] }
 0x1b8   :  { %1237 = vmatpush.bf16.msrb.mxu0 %v2776_v34  ;;  %v3398_v34 = vld [vmem:[#allocation9 + $0x7c] sm:$0xf] }
 0x22a   :  { %v983_v61 = vpop.f32.mrf.mxu1 }
 0x22b   :  { %v1013_v3 = vadd.f32 %v983_v61, %v3823_v57  ;;  %v1058_v61 = vrot.slane %v3823_v57, 2 }
 0x22d   :  { %v2771_v7 = vmul.f32 -1.442695, %v1013_v3 }
 0x22f   :  { %3508 = vpow2.f32 %v2771_v7 }
 0x230   :  { %v996_v54 = vpop.f32.mrf.mxu2 }
 0x231   :  { %v1036_v18 = vadd.f32 %v1034_v14, %v996_v54  ;;  %v1009_v53 = vpop.f32.mrf.mxu3  ;;  %v3404_v54 = vld [vmem:[#allocation9 + $0xac] sm:$0xf] }
 0x232   :  { %v985_v23 = vpop.f32.mrf.mxu1  ;;  %v1056_v60 = vadd.f32 %v1009_v53, %v3798_v62  ;;  %v2965_v53 = vld [vmem:[#allocation9 + $0xb0] sm:$0xf] }
 0x233   :  { %v2772_v28 = vmul.f32 -1.442695, %v1036_v18  ;;  %v2959_v18 = vld [vmem:[#allocation9 + $0xb4] sm:$0xf0]  ;;  %v2966_v22 = vor.u32 %v3406_v20, %v2965_v53  ;;  %v2945_v23 = vld [vmem:[#allocation9 + $0x90] sm:$0xf]  ;;  %v2906_v53 = vor.u32 %v3391_v16, %v2905_v15 }
 0x234   :  { %v2962_v21 = vor.u32 %v3404_v54, %v2959_v18  ;;  %v2946_v26 = vor.u32 %v3402_v4, %v2945_v23  ;;  %v2885_v20 = vld [vmem:[#allocation9 + $0x18] sm:$0xf]  ;;  %v3386_v4 = vld [vmem:[#allocation9 + $0x1c] sm:$0xf]  ;;  %v3063_v15 = vld [vmem:[#allocation9 + $0xb0] sm:$0xf] }
 0x235   :  { %v3509_v33 = vpop.eup %3508  ;;  %3510 = vpow2.f32 %v2772_v28  ;;  %1512 = vmatpush.bf16.msra.mxu1 %v2966_v22  ;;  %v2953_v28 = vld [vmem:[#allocation9 + $0x98] sm:$0xf]  ;;  %v3430_v16 = vld [vmem:[#allocation9 + $0xb8] sm:$0xf0] }
 0x236   :  { %v1017_v37 = vadd.f32 1.0, %v3509_v33  ;;  %1499 = vmatpush.bf16.msra.mxu0 %v2962_v21  ;;  %v2954_v30 = vor.u32 %v3403_v24, %v2953_v28  ;;  %1487 = vmatpush.bf16.msrb.mxu3 %v2946_v26  ;;  %v3399_v33 = vld [vmem:[#allocation9 + $0x80] sm:$0xf0]  ;;  %v2893_v26 = vld [vmem:[#allocation9 + $0x20] sm:$0xf]  ;;  %v2890_v24 = vor.u32 %v3386_v4, %v2887_v25 }
 0x237   :  { %v2934_v40 = vor.u32 %v3399_v33, %v2933_v32  ;;  %v3387_v21 = vld [vmem:[#allocation9 + $0x20] sm:$0xf0]  ;;  %v3388_v28 = vld [vmem:[#allocation9 + $0x28] sm:$0xf0]  ;;  %v3425_v4 = vld [vmem:[#allocation9 + $0x94] sm:$0xf] }
 0x238   :  { %3512 = vrcp.f32 %v1017_v37  ;;  %v998_v41 = vpop.f32.mrf.mxu2  ;;  %v1029_v48 = vand.u32 2147483648, %v1017_v37  ;;  %v1027_v50 = vand.u32 2147483647, %v1017_v37  ;;  %vm1023_vm1 = vweird.f32 %v1017_v37  ;;  %v3383_v33 = vld [vmem:[#allocation9 + $0x4] sm:$0xf] }
 0x239   :  { %v1011_v42 = vpop.f32.mrf.mxu3  ;;  %1513 = vmatpush.bf16.msra.mxu1 %v2954_v30  ;;  %v2938_v41 = vor.u32 %v3398_v34, %v2935_v35  ;;  %v2886_v23 = vor.u32 %v3387_v21, %v2885_v20  ;;  %v2873_v30 = vld [vmem:[#allocation9] sm:$0xf]  ;;  %v2875_v34 = vld [vmem:[#allocation9 + $0xc] sm:$0xf0]  ;;  %v2881_v35 = vld [vmem:[#allocation9 + $0x8] sm:$0xf] }
 0x23a   :  { %v1030_v56 = vor.u32 1.1754944e-38, %v1029_v48  ;;  %vm1028_vm3 = vcmp.eq.f32.partialorder %v1027_v50, 8.507059e+37  ;;  %1500 = vmatpush.bf16.msra.mxu0 %v2950_v29  ;;  %1488 = vmatpush.bf16.msrb.mxu3 %v2934_v40  ;;  %v2894_v29 = vor.u32 %v3388_v28, %v2893_v26  ;;  %v2878_v40 = vor.u32 %v3383_v33, %v2875_v34  ;;  %v3043_v21 = vld [vmem:[#allocation9 + $0x90] sm:$0xf]  ;;  %v3045_v25 = vld [vmem:[#allocation9 + $0x9c] sm:$0xf0] }
 0x23b   :  { %v3511_v43 = vpop.eup %3510  ;;  %v3051_v26 = vld [vmem:[#allocation9 + $0x98] sm:$0xf]  ;;  %v3427_v28 = vld [vmem:[#allocation9 + $0xa0] sm:$0xf0]  ;;  %v3422_v33 = vld [vmem:[#allocation9 + $0x7c] sm:$0xf] }
 0x23c   :  { %v1040_v44 = vadd.f32 1.0, %v3511_v43  ;;  %v3033_v34 = vld [vmem:[#allocation9 + $0x84] sm:$0xf0] }
 0x23e   :  { %v3513_v45 = vpop.eup %3512  ;;  %3514 = vrcp.f32 %v1040_v44  ;;  %v1052_v1 = vand.u32 2147483648, %v1040_v44  ;;  %v1050_v3 = vand.u32 2147483647, %v1040_v44  ;;  %vm1046_vm5 = vweird.f32 %v1040_v44  ;;  %1501 = vmatpush.bf16.msra.mxu0 %v2938_v41 }
 0x23f   :  { %v1019_v46 = vmul.f32 %v3513_v45, %v1017_v37  ;;  %vm1024_vm0 = vweird.f32 %v3513_v45  ;;  %v3400_v37 = vld [vmem:[#allocation9 + $0x88] sm:$0xf0] }
 0x240   :  { %vm1025_vm2 = vmor %vm1023_vm1, %vm1024_vm0  ;;  %v1053_v7 = vor.u32 1.1754944e-38, %v1052_v1  ;;  %vm1051_vm7 = vcmp.eq.f32.partialorder %v1050_v3, 8.507059e+37  ;;  %v2942_v42 = vor.u32 %v3400_v37, %v2941_v36  ;;  %v2911_v1 = vld [vmem:[#allocation9 + $0x54] sm:$0xf0]  ;;  %v3394_v3 = vld [vmem:[#allocation9 + $0x58] sm:$0xf0] }
 0x241   :  { %v1020_v47 = vsub.f32 1.0, %v1019_v46  ;;  %v3396_v46 = vld [vmem:[#allocation9 + $0x68] sm:$0xf0]  ;;  %v3385_v36 = vld [vmem:[#allocation9 + $0x10] sm:$0xf0] }
 0x242   :  { %1514 = vmatpush.bf16.msra.mxu1 %v2942_v42  ;;  %v2882_v37 = vor.u32 %v3385_v36, %v2881_v35  ;;  %v3036_v36 = vor.u32 %v3422_v33, %v3033_v34 }
 0x243   :  { %v1021_v49 = vmul.f32 %v3513_v45, %v1020_v47  ;;  %v3395_v47 = vld [vmem:[#allocation9 + $0x64] sm:$0xf] }
 0x244   :  { %v3515_v51 = vpop.eup %3514 }
 0x245   :  { %v1042_v52 = vmul.f32 %v3515_v51, %v1040_v44  ;;  %v1022_v55 = vadd.f32 %v3513_v45, %v1021_v49  ;;  %vm1047_vm4 = vweird.f32 %v3515_v51 }
 0x246   :  { %vm1048_vm6 = vmor %vm1046_vm5, %vm1047_vm4 }
 0x247   :  { %v1043_v58 = vsub.f32 1.0, %v1042_v52  ;;  %v1026_v59 = vsel %vm1025_vm2, %v3513_v45, %v1022_v55  ;;  %v2921_v45 = vld [vmem:[#allocation9 + $0x60] sm:$0xf]  ;;  %v2929_v55 = vld [vmem:[#allocation9 + $0x68] sm:$0xf] }
 0x248   :  { %v1031_v63 = vsel %vm1028_vm3, %v1030_v56, %v1026_v59  ;;  %v2922_v50 = vor.u32 %v3396_v46, %v2921_v45  ;;  %v3397_v56 = vld [vmem:[#allocation9 + $0x70] sm:$0xf0]  ;;  %v2909_v59 = vld [vmem:[#allocation9 + $0x48] sm:$0xf] }
 0x249   :  { %v1044_v0 = vmul.f32 %v3515_v51, %v1043_v58  ;;  %v1057_v2 = vmul.f32 %v1056_v60, %v1031_v63  ;;  %v2930_v58 = vor.u32 %v3397_v56, %v2929_v55  ;;  %v3393_v60 = vld [vmem:[#allocation9 + $0x50] sm:$0xf0] }
 0x24a   :  { %1489 = vmatpush.bf16.msrb.mxu3 %v2922_v50 }
 0x24b   :  { %v1045_v5 = vadd.f32 %v3515_v51, %v1044_v0  ;;  %v1060_v6 = vadd.f32 %v1058_v61, %v1057_v2  ;;  %v3392_v61 = vld [vmem:[#allocation9 + $0x4c] sm:$0xf]  ;;  %1515 = vmatpush.bf16.msra.mxu1 %v2930_v58  ;;  %v2910_v0 = vor.u32 %v3393_v60, %v2909_v59  ;;  %v2917_v2 = vld [vmem:[#allocation9 + $0x50] sm:$0xf] }
 0x24d   :  { %v1049_v8 = vsel %vm1048_vm6, %v3515_v51, %v1045_v5  ;;  %3516 = vtanh.f32 %v1060_v6  ;;  %v2923_v51 = vld [vmem:[#allocation9 + $0x6c] sm:$0xf0] }
 0x24e   :  { %v1054_v9 = vsel %vm1051_vm7, %v1053_v7, %v1049_v8  ;;  %v2926_v52 = vor.u32 %v3395_v47, %v2923_v51  ;;  %v2914_v7 = vor.u32 %v3392_v61, %v2911_v1  ;;  %v2918_v8 = vor.u32 %v3394_v3, %v2917_v2  ;;  %1490 = vmatpush.bf16.msrb.mxu3 %v2910_v0 }
 0x24f   :  { %v1062_v10 = vsub.f32 1.0, %v1054_v9  ;;  %v1064_v57 = vmul.f32 %v1054_v9, %v3818_v19  ;;  %v3835_v19 = vld [vmem:[#allocation2 + $0x3] ss:$8 sm:$0x7]  ;;  %v2897_v9 = vld [vmem:[#allocation9 + $0x30] sm:$0xf] }
 0x250   :  { %v1290_v31 = vrot.slane %v3835_v19, 1  ;;  %1502 = vmatpush.bf16.msra.mxu0 %v2926_v52  ;;  %1516 = vmatpush.bf16.msra.mxu1 %v2918_v8  ;;  %v1314_v58 = vrot.slane %v3835_v19, 2  ;;  %v3850_v8 = vld [vmem:[#allocation2 + $0x4] ss:$8 sm:$0x7] }
 0x253   :  { %v3517_v11 = vpop.eup %3516 }
 0x254   :  { %v1063_v12 = vmul.f32 %v3517_v11, %v1062_v10  ;;  %1503 = vmatpush.bf16.msra.mxu0 %v2914_v7  ;;  %v3390_v10 = vld [vmem:[#allocation9 + $0x38] sm:$0xf0]  ;;  %v3389_v11 = vld [vmem:[#allocation9 + $0x34] sm:$0xf]  ;;  %1517 = vmatpush.bf16.msra.mxu1 %v2906_v53  ;;  %v3064_v53 = vor.u32 %v3430_v16, %v3063_v15  ;;  %v3411_v15 = vld [vmem:[#allocation9 + $0x20] sm:$0xf0] }
 0x256   :  { %v3830_v13 = vadd.f32 %v1064_v57, %v1063_v12  ;;  %v2898_v57 = vor.u32 %v3390_v10, %v2897_v9  ;;  %v1546_v9 = vrot.slane %v3850_v8, 1  ;;  %v3055_v10 = vld [vmem:[#allocation9 + $0xa8] sm:$0xf] }
 0x258   :  { %1066 = vst [vmem:[#allocation11 + $0x2] sm:$0x1] %v3830_v13  ;;  %v1069_v14 = vpack.c.bf16 %v3830_v13, %v3830_v13  ;;  %1491 = vmatpush.bf16.msrb.mxu3 %v2898_v57  ;;  %1518 = vmatpush.bf16.msra.mxu1 %v2894_v29  ;;  %v3423_v29 = vld [vmem:[#allocation9 + $0x80] sm:$0xf0] }
 0x25a   :  { %1238 = vmatmul.bf16.vlgmr.msrb.gmra.mxu0 %v1069_v14  ;;  %1251 = vmatmul.bf16.vlgmr.msrb.gmra.mxu1 %v1069_v14 }
 0x25b   :  { %1264 = vmatmul.bf16.vlgmr.msrb.gmra.mxu2 %v1069_v14  ;;  %v2899_v14 = vld [vmem:[#allocation9 + $0x3c] sm:$0xf0] }
 0x25c   :  { %v2902_v18 = vor.u32 %v3389_v11, %v2899_v14  ;;  %1492 = vmatpush.bf16.msrb.mxu3 %v2886_v23  ;;  %1519 = vmatpush.bf16.msra.mxu1 %v2882_v37  ;;  %v3429_v11 = vld [vmem:[#allocation9 + $0xb0] sm:$0xf0]  ;;  %v3424_v37 = vld [vmem:[#allocation9 + $0x88] sm:$0xf0] }
 0x25d   :  { %v3056_v14 = vor.u32 %v3429_v11, %v3055_v10  ;;  %v3003_v10 = vld [vmem:[#allocation9 + $0x38] sm:$0xf]  ;;  %v3415_v11 = vld [vmem:[#allocation9 + $0x40] sm:$0xf0] }
 0x25e   :  { %1504 = vmatpush.bf16.msra.mxu0 %v2902_v18  ;;  %v3004_v16 = vor.u32 %v3415_v11, %v3003_v10 }
 0x25f   :  { %1742 = vmatpush.bf16.msra.mxu2 %v3056_v14 }
 0x262   :  { %1505 = vmatpush.bf16.msra.mxu0 %v2890_v24  ;;  %v3031_v24 = vld [vmem:[#allocation9 + $0x78] sm:$0xf] }
 0x266   :  { %1506 = vmatpush.bf16.msra.mxu0 %v2878_v40  ;;  %v3039_v40 = vld [vmem:[#allocation9 + $0x80] sm:$0xf] }
 0x26a   :  { %1768 = vmatpush.bf16.msrb.mxu0 %v3064_v53 }
 0x2d7   :  { %v1239_v38 = vpop.f32.mrf.mxu0  ;;  %v1252_v39 = vpop.f32.mrf.mxu1 }
 0x2d8   :  { %v1269_v43 = vadd.f32 %v1239_v38, %v3835_v19  ;;  %v1292_v44 = vadd.f32 %v1290_v31, %v1252_v39  ;;  %v3384_v31 = vld [vmem:[#allocation9 + $0x8] sm:$0xf0] }
 0x2d9   :  { %v2874_v32 = vor.u32 %v3384_v31, %v2873_v30  ;;  %v3052_v31 = vor.u32 %v3427_v28, %v3051_v26  ;;  %v3407_v28 = vld [vmem:[#allocation9 + $0x4] sm:$0xf] }
 0x2da   :  { %v2869_v48 = vmul.f32 -1.442695, %v1269_v43  ;;  %v2870_v49 = vmul.f32 -1.442695, %v1292_v44 }
 0x2db   :  { %1493 = vmatpush.bf16.msrb.mxu3 %v2874_v32  ;;  %v3032_v32 = vor.u32 %v3423_v29, %v3031_v24  ;;  %1769 = vmatpush.bf16.msrb.mxu0 %v3052_v31  ;;  %v2973_v24 = vld [vmem:[#allocation9 + $0xc] sm:$0xf0]  ;;  %v2979_v29 = vld [vmem:[#allocation9 + $0x8] sm:$0xf] }
 0x2dc   :  { %3518 = vpow2.f32 %v2869_v48  ;;  %v2976_v34 = vor.u32 %v3407_v28, %v2973_v24 }
 0x2dd   :  { %3520 = vpow2.f32 %v2870_v49 }
 0x2de   :  { %v3839_v63 = vpop.f32.mrf.mxu2 }
 0x2df   :  { %v1241_v5 = vpop.f32.mrf.mxu0  ;;  %v1254_v6 = vpop.f32.mrf.mxu1  ;;  %v1312_v52 = vadd.f32 %v3839_v63, %v3798_v62 }
 0x2e2   :  { %v3519_v12 = vpop.eup %3518 }
 0x2e3   :  { %v3521_v54 = vpop.eup %3520  ;;  %v1273_v17 = vadd.f32 1.0, %v3519_v12  ;;  %v3428_v12 = vld [vmem:[#allocation9 + $0xac] sm:$0xf] }
 0x2e4   :  { %v1296_v22 = vadd.f32 1.0, %v3521_v54 }
 0x2e5   :  { %3522 = vrcp.f32 %v1273_v17  ;;  %v1285_v45 = vand.u32 2147483648, %v1273_v17  ;;  %v1283_v47 = vand.u32 2147483647, %v1273_v17  ;;  %vm1279_vm9 = vweird.f32 %v1273_v17 }
 0x2e6   :  { %3524 = vrcp.f32 %v1296_v22  ;;  %v1267_v27 = vpop.f32.mrf.mxu2  ;;  %v1308_v59 = vand.u32 2147483648, %v1296_v22  ;;  %vm1302_vm13 = vweird.f32 %v1296_v22  ;;  %v1306_v61 = vand.u32 2147483647, %v1296_v22 }
 0x2e7   :  { %v1286_v50 = vor.u32 1.1754944e-38, %v1285_v45  ;;  %vm1284_vm11 = vcmp.eq.f32.partialorder %v1283_v47, 8.507059e+37  ;;  %v3048_v27 = vor.u32 %v3425_v4, %v3045_v25  ;;  %v3027_v47 = vld [vmem:[#allocation9 + $0x68] sm:$0xf]  ;;  %v2971_v4 = vld [vmem:[#allocation9] sm:$0xf] }
 0x2e8   :  { %v1309_v2 = vor.u32 1.1754944e-38, %v1308_v59  ;;  %vm1307_vm15 = vcmp.eq.f32.partialorder %v1306_v61, 8.507059e+37  ;;  %v3416_v59 = vld [vmem:[#allocation9 + $0x4c] sm:$0xf]  ;;  %v3015_v61 = vld [vmem:[#allocation9 + $0x50] sm:$0xf] }
 0x2e9   :  { %v3408_v25 = vld [vmem:[#allocation9 + $0x8] sm:$0xf0] }
 0x2eb   :  { %v3523_v38 = vpop.eup %3522 }
 0x2ec   :  { %v3525_v39 = vpop.eup %3524  ;;  %v1275_v41 = vmul.f32 %v3523_v38, %v1273_v17  ;;  %vm1280_vm8 = vweird.f32 %v3523_v38 }
 0x2ed   :  { %v1298_v42 = vmul.f32 %v3525_v39, %v1296_v22  ;;  %vm1281_vm10 = vmor %vm1279_vm9, %vm1280_vm8  ;;  %vm1303_vm12 = vweird.f32 %v3525_v39  ;;  %v3426_v22 = vld [vmem:[#allocation9 + $0x98] sm:$0xf0] }
 0x2ee   :  { %v1276_v43 = vsub.f32 1.0, %v1275_v41  ;;  %vm1304_vm14 = vmor %vm1302_vm13, %vm1303_vm12  ;;  %v3044_v23 = vor.u32 %v3426_v22, %v3043_v21  ;;  %v3412_v21 = vld [vmem:[#allocation9 + $0x28] sm:$0xf0] }
 0x2ef   :  { %v1299_v44 = vsub.f32 1.0, %v1298_v42  ;;  %v3040_v42 = vor.u32 %v3424_v37, %v3039_v40 }
 0x2f0   :  { %v1277_v46 = vmul.f32 %v3523_v38, %v1276_v43  ;;  %1743 = vmatpush.bf16.msra.mxu2 %v3044_v23  ;;  %v3419_v43 = vld [vmem:[#allocation9 + $0x64] sm:$0xf] }
 0x2f1   :  { %v1300_v48 = vmul.f32 %v3525_v39, %v1299_v44  ;;  %v3021_v44 = vld [vmem:[#allocation9 + $0x6c] sm:$0xf0]  ;;  %1770 = vmatpush.bf16.msrb.mxu0 %v3040_v42 }
 0x2f2   :  { %v1278_v49 = vadd.f32 %v3523_v38, %v1277_v46 }
 0x2f3   :  { %v1301_v55 = vadd.f32 %v3525_v39, %v1300_v48  ;;  %v3421_v48 = vld [vmem:[#allocation9 + $0x70] sm:$0xf0] }
 0x2f4   :  { %v1282_v51 = vsel %vm1281_vm10, %v3523_v38, %v1278_v49  ;;  %v3019_v38 = vld [vmem:[#allocation9 + $0x60] sm:$0xf]  ;;  %1744 = vmatpush.bf16.msra.mxu2 %v3032_v32  ;;  %v2972_v32 = vor.u32 %v3408_v25, %v2971_v4  ;;  %v3129_v25 = vld [vmem:[#allocation9 + $0x78] sm:$0xf] }
 0x2f5   :  { %v1287_v56 = vsel %vm1284_vm11, %v1286_v50, %v1282_v51  ;;  %v1305_v1 = vsel %vm1304_vm14, %v3525_v39, %v1301_v55  ;;  %v3420_v39 = vld [vmem:[#allocation9 + $0x68] sm:$0xf0]  ;;  %v3024_v51 = vor.u32 %v3419_v43, %v3021_v44  ;;  %v3417_v55 = vld [vmem:[#allocation9 + $0x50] sm:$0xf0]  ;;  %v3863_v44 = vld [vmem:[%s3934_s5] sm:$0x1] }
 0x2f6   :  { %v1313_v60 = vmul.f32 %v1312_v52, %v1287_v56  ;;  %v1310_v3 = vsel %vm1307_vm15, %v1309_v2, %v1305_v1  ;;  %v3020_v49 = vor.u32 %v3420_v39, %v3019_v38  ;;  %v3007_v52 = vld [vmem:[#allocation9 + $0x48] sm:$0xf]  ;;  %s3730_s5 = smov [#allocation11]  }
 0x2f7   :  { %v1318_v5 = vsub.f32 1.0, %v1310_v3  ;;  %v1320_v62 = vmul.f32 %v1310_v3, %v3830_v13  ;;  %v3057_v13 = vld [vmem:[#allocation9 + $0xb4] sm:$0xf0]  ;;  %v3008_v2 = vor.u32 %v3417_v55, %v3007_v52  ;;  %s2353_s24 = sshll.u32 %s3730_s5, 4  ;;  %s2354_s24 = int_to_ptr.vmem [resolvable:$true] %s2353_s24 }
 0x2f8   :  { %v1316_v0 = vadd.f32 %v1314_v58, %v1313_v60  ;;  %v3060_v18 = vor.u32 %v3428_v12, %v3057_v13  ;;  %v3028_v58 = vor.u32 %v3421_v48, %v3027_v47  ;;  %v3009_v60 = vld [vmem:[#allocation9 + $0x54] sm:$0xf0]  ;;  %1745 = vmatpush.bf16.msra.mxu2 %v3020_v49 }
 0x2f9   :  { %v3012_v3 = vor.u32 %v3416_v59, %v3009_v60  ;;  %v2983_v13 = vld [vmem:[#allocation9 + $0x18] sm:$0xf] }
 0x2fa   :  { %3526 = vtanh.f32 %v1316_v0  ;;  %1755 = vmatpush.bf16.msra.mxu3 %v3060_v18  ;;  %v3418_v0 = vld [vmem:[#allocation9 + $0x58] sm:$0xf0]  ;;  %1771 = vmatpush.bf16.msrb.mxu0 %v3028_v58  ;;  %v2985_v18 = vld [vmem:[#allocation9 + $0x24] sm:$0xf0]  ;;  %v2984_v22 = vor.u32 %v3411_v15, %v2983_v13  ;;  %v3449_v13 = vld [vmem:[#allocation9 + $0x94] sm:$0xf] }
 0x2fc   :  { %1746 = vmatpush.bf16.msra.mxu2 %v3008_v2 }
 0x2fe   :  { %1756 = vmatpush.bf16.msra.mxu3 %v3048_v27 }
 0x300   :  { %v3527_v6 = vpop.eup %3526 }
 0x301   :  { %v1319_v7 = vmul.f32 %v3527_v6, %v1318_v5  ;;  %v2995_v5 = vld [vmem:[#allocation9 + $0x30] sm:$0xf]  ;;  %v3414_v6 = vld [vmem:[#allocation9 + $0x38] sm:$0xf0] }
 0x302   :  { %1757 = vmatpush.bf16.msra.mxu3 %v3036_v36 }
 0x303   :  { %v3845_v63 = vadd.f32 %v1320_v62, %v1319_v7  ;;  %v3016_v7 = vor.u32 %v3418_v0, %v3015_v61  ;;  %v3413_v62 = vld [vmem:[#allocation9 + $0x34] sm:$0xf] }
 0x305   :  { %1322 = vst [vmem:[#allocation11 + $0x3] sm:$0x1] %v3845_v63  ;;  %v1325_v19 = vpack.c.bf16 %v3845_v63, %v3845_v63  ;;  %1772 = vmatpush.bf16.msrb.mxu0 %v3016_v7 }
 0x306   :  { %1758 = vmatpush.bf16.msra.mxu3 %v3024_v51 }
 0x307   :  { %1494 = vmatmul.bf16.vlgmr.msrb.gmra.mxu3 %v1325_v19  ;;  %1507 = vmatmul.bf16.vlgmr.msra.gmra.mxu0 %v1325_v19 }
 0x308   :  { %1520 = vmatmul.bf16.vlgmr.msra.gmra.mxu1 %v1325_v19  ;;  %v2997_v19 = vld [vmem:[#allocation9 + $0x3c] sm:$0xf0] }
 0x309   :  { %v3000_v14 = vor.u32 %v3413_v62, %v2997_v19  ;;  %1773 = vmatpush.bf16.msrb.mxu0 %v3004_v16  ;;  %v3155_v19 = vld [vmem:[#allocation9 + $0xb4] sm:$0xf0]  ;;  %v3143_v16 = vld [vmem:[#allocation9 + $0x9c] sm:$0xf0] }
 0x30a   :  { %1759 = vmatpush.bf16.msra.mxu3 %v3012_v3  ;;  %v3153_v3 = vld [vmem:[#allocation9 + $0xa8] sm:$0xf] }
 0x30e   :  { %1760 = vmatpush.bf16.msra.mxu3 %v3000_v14  ;;  %v3450_v14 = vld [vmem:[#allocation9 + $0x98] sm:$0xf0] }
 0x384   :  { %v1508_v57 = vpop.f32.mrf.mxu0 }
 0x385   :  { %v1548_v54 = vadd.f32 %v1546_v9, %v1508_v57  ;;  %v3853_v17 = vpop.f32.mrf.mxu1  ;;  %v2996_v57 = vor.u32 %v3414_v6, %v2995_v5  ;;  %v3453_v5 = vld [vmem:[#allocation9 + $0xb0] sm:$0xf0]  ;;  %v3452_v6 = vld [vmem:[#allocation9 + $0xac] sm:$0xf] }
 0x386   :  { %v3154_v62 = vor.u32 %v3453_v5, %v3153_v3  ;;  %v3158_v10 = vor.u32 %v3452_v6, %v3155_v19  ;;  %v3101_v6 = vld [vmem:[#allocation9 + $0x38] sm:$0xf] }
 0x387   :  { %v2968_v20 = vmul.f32 -1.442695, %v1548_v54  ;;  %v3410_v54 = vld [vmem:[#allocation9 + $0x1c] sm:$0xf]  ;;  %1747 = vmatpush.bf16.msra.mxu2 %v2996_v57  ;;  %v3141_v57 = vld [vmem:[#allocation9 + $0x90] sm:$0xf] }
 0x388   :  { %v2988_v23 = vor.u32 %v3410_v54, %v2985_v18  ;;  %1998 = vmatpush.bf16.msrb.mxu1 %v3154_v62  ;;  %v3142_v15 = vor.u32 %v3450_v14, %v3141_v57  ;;  %v3149_v54 = vld [vmem:[#allocation9 + $0x98] sm:$0xf]  ;;  %v3451_v18 = vld [vmem:[#allocation9 + $0xa0] sm:$0xf0]  ;;  %v3434_v57 = vld [vmem:[#allocation9 + $0x1c] sm:$0xf] }
 0x389   :  { %3528 = vpow2.f32 %v2968_v20  ;;  %v2991_v20 = vld [vmem:[#allocation9 + $0x20] sm:$0xf]  ;;  %v3439_v62 = vld [vmem:[#allocation9 + $0x40] sm:$0xf0]  ;;  %v3083_v14 = vld [vmem:[#allocation9 + $0x24] sm:$0xf0] }
 0x38a   :  { %v1495_v30 = vpop.f32.mrf.mxu3  ;;  %v2992_v27 = vor.u32 %v3412_v21, %v2991_v20  ;;  %1761 = vmatpush.bf16.msra.mxu3 %v2988_v23  ;;  %v3146_v21 = vor.u32 %v3449_v13, %v3143_v16  ;;  %v3089_v13 = vld [vmem:[#allocation9 + $0x20] sm:$0xf] }
 0x38b   :  { %v1525_v35 = vadd.f32 %v1495_v30, %v3850_v8  ;;  %v3409_v30 = vld [vmem:[#allocation9 + $0x10] sm:$0xf0]  ;;  %1748 = vmatpush.bf16.msra.mxu2 %v2984_v22  ;;  %v3150_v22 = vor.u32 %v3451_v18, %v3149_v54  ;;  %v3086_v54 = vor.u32 %v3434_v57, %v3083_v14  ;;  %v3069_v18 = vld [vmem:[#allocation9] sm:$0xf]  ;;  %v3475_v57 = vld [vmem:[#allocation9 + $0xa0] sm:$0xf0] }
 0x38c   :  { %v1510_v41 = vpop.f32.mrf.mxu0  ;;  %1774 = vmatpush.bf16.msrb.mxu0 %v2992_v27  ;;  %1999 = vmatpush.bf16.msrb.mxu1 %v3142_v15  ;;  %v3446_v27 = vld [vmem:[#allocation9 + $0x7c] sm:$0xf]  ;;  %v3436_v15 = vld [vmem:[#allocation9 + $0x28] sm:$0xf0] }
 0x38d   :  { %v2967_v45 = vmul.f32 -1.442695, %v1525_v35  ;;  %v1523_v46 = vpop.f32.mrf.mxu1  ;;  %v2980_v35 = vor.u32 %v3409_v30, %v2979_v29 }
 0x38e   :  { %1762 = vmatpush.bf16.msra.mxu3 %v2976_v34  ;;  %v3448_v34 = vld [vmem:[#allocation9 + $0x88] sm:$0xf0] }
 0x38f   :  { %v3529_v50 = vpop.eup %3528  ;;  %3530 = vpow2.f32 %v2967_v45  ;;  %1749 = vmatpush.bf16.msra.mxu2 %v2972_v32  ;;  %v1568_v45 = vadd.f32 %v3863_v44, %v3853_v17 }
 0x390   :  { %v3856_v56 = vadd.f32 1.0, %v3529_v50  ;;  %1775 = vmatpush.bf16.msrb.mxu0 %v2980_v35  ;;  %v1570_v50 = vrot.slane %v3850_v8, 2 }
 0x392   :  { %v1497_v1 = vpop.f32.mrf.mxu3  ;;  %3532 = vrcp.f32 %v3856_v56  ;;  %v1564_v49 = vand.u32 2147483648, %v3856_v56  ;;  %vm1558_vm5 = vweird.f32 %v3856_v56  ;;  %v1562_v52 = vand.u32 2147483647, %v3856_v56 }
 0x393   :  { %2011 = vmatpush.bf16.msrb.mxu2 %v3158_v10  ;;  %v3081_v10 = vld [vmem:[#allocation9 + $0x18] sm:$0xf] }
 0x394   :  { %v1565_v59 = vor.u32 1.1754944e-38, %v1564_v49  ;;  %vm1563_vm7 = vcmp.eq.f32.partialorder %v1562_v52, 8.507059e+37  ;;  %v3107_v49 = vld [vmem:[#allocation9 + $0x54] sm:$0xf0]  ;;  %v3113_v52 = vld [vmem:[#allocation9 + $0x50] sm:$0xf] }
 0x395   :  { %v3531_v9 = vpop.eup %3530 }
 0x396   :  { %v1529_v12 = vadd.f32 1.0, %v3531_v9  ;;  %v3454_v9 = vld [vmem:[#allocation9 + $0xb8] sm:$0xf0] }
 0x397   :  { %2012 = vmatpush.bf16.msrb.mxu2 %v3146_v21  ;;  %v3431_v21 = vld [vmem:[#allocation9 + $0x4] sm:$0xf] }
 0x398   :  { %3534 = vrcp.f32 %v1529_v12  ;;  %v3533_v53 = vpop.eup %3532  ;;  %v1541_v37 = vand.u32 2147483648, %v1529_v12  ;;  %v1539_v39 = vand.u32 2147483647, %v1529_v12  ;;  %vm1535_vm1 = vweird.f32 %v1529_v12 }
 0x399   :  { %v1554_v26 = vmul.f32 %v3533_v53, %v3856_v56  ;;  %vm1559_vm4 = vweird.f32 %v3533_v53  ;;  %v3877_v56 = vld [vmem:[#allocation2 + $0x5] ss:$8 sm:$0x7] }
 0x39a   :  { %v1542_v43 = vor.u32 1.1754944e-38, %v1541_v37  ;;  %vm1540_vm3 = vcmp.eq.f32.partialorder %v1539_v39, 8.507059e+37  ;;  %vm1560_vm6 = vmor %vm1558_vm5, %vm1559_vm4  ;;  %v3443_v37 = vld [vmem:[#allocation9 + $0x64] sm:$0xf] }
 0x39b   :  { %v1555_v40 = vsub.f32 1.0, %v1554_v26  ;;  %v3447_v26 = vld [vmem:[#allocation9 + $0x80] sm:$0xf0] }
 0x39c   :  { %v3130_v30 = vor.u32 %v3447_v26, %v3129_v25  ;;  %v3433_v25 = vld [vmem:[#allocation9 + $0x10] sm:$0xf0] }
 0x39d   :  { %v1556_v41 = vmul.f32 %v3533_v53, %v1555_v40  ;;  %v3117_v40 = vld [vmem:[#allocation9 + $0x60] sm:$0xf] }
 0x39e   :  { %v3535_v31 = vpop.eup %3534  ;;  %2000 = vmatpush.bf16.msrb.mxu1 %v3130_v30 }
 0x39f   :  { %v1531_v33 = vmul.f32 %v3535_v31, %v1529_v12  ;;  %vm1536_vm0 = vweird.f32 %v3535_v31  ;;  %v1557_v47 = vadd.f32 %v3533_v53, %v1556_v41  ;;  %v1802_v12 = vrot.slane %v3877_v56, 1 }
 0x3a0   :  { %vm1537_vm2 = vmor %vm1535_vm1, %vm1536_vm0 }
 0x3a1   :  { %v1532_v36 = vsub.f32 1.0, %v1531_v33  ;;  %v1561_v58 = vsel %vm1560_vm6, %v3533_v53, %v1557_v47  ;;  %v3137_v33 = vld [vmem:[#allocation9 + $0x80] sm:$0xf]  ;;  %v3441_v47 = vld [vmem:[#allocation9 + $0x50] sm:$0xf0] }
 0x3a2   :  { %v1566_v17 = vsel %vm1563_vm7, %v1565_v59, %v1561_v58  ;;  %v3138_v35 = vor.u32 %v3448_v34, %v3137_v33 }
 0x3a3   :  { %v1533_v38 = vmul.f32 %v3535_v31, %v1532_v36  ;;  %v1574_v60 = vsub.f32 1.0, %v1566_v17  ;;  %v1576_v1 = vmul.f32 %v1566_v17, %v3845_v63  ;;  %v3161_v63 = vld [vmem:[#allocation9 + $0xb0] sm:$0xf]  ;;  %v3444_v36 = vld [vmem:[#allocation9 + $0x68] sm:$0xf0] }
 0x3a4   :  { %v3162_v11 = vor.u32 %v3454_v9, %v3161_v63  ;;  %v3118_v39 = vor.u32 %v3444_v36, %v3117_v40  ;;  %v3093_v17 = vld [vmem:[#allocation9 + $0x30] sm:$0xf] }
 0x3a5   :  { %v1534_v42 = vadd.f32 %v3535_v31, %v1533_v38  ;;  %v3119_v38 = vld [vmem:[#allocation9 + $0x6c] sm:$0xf0] }
 0x3a6   :  { %2024 = vmatpush.bf16.msrb.mxu3 %v3162_v11  ;;  %v3122_v41 = vor.u32 %v3443_v37, %v3119_v38  ;;  %2001 = vmatpush.bf16.msrb.mxu1 %v3118_v39  ;;  %v3435_v11 = vld [vmem:[#allocation9 + $0x20] sm:$0xf0] }
 0x3a7   :  { %v1538_v46 = vsel %vm1537_vm2, %v3535_v31, %v1534_v42  ;;  %v3131_v31 = vld [vmem:[#allocation9 + $0x84] sm:$0xf0]  ;;  %v3082_v16 = vor.u32 %v3435_v11, %v3081_v10  ;;  %v3241_v11 = vld [vmem:[#allocation9 + $0x9c] sm:$0xf0] }
 0x3a8   :  { %v1543_v48 = vsel %vm1540_vm3, %v1542_v43, %v1538_v46  ;;  %v3134_v32 = vor.u32 %v3446_v27, %v3131_v31  ;;  %v3125_v42 = vld [vmem:[#allocation9 + $0x68] sm:$0xf]  ;;  %v3445_v43 = vld [vmem:[#allocation9 + $0x70] sm:$0xf0] }
 0x3a9   :  { %v1569_v51 = vmul.f32 %v1568_v45, %v1543_v48  ;;  %v3105_v45 = vld [vmem:[#allocation9 + $0x48] sm:$0xf]  ;;  %v3126_v46 = vor.u32 %v3445_v43, %v3125_v42  ;;  %v3440_v48 = vld [vmem:[#allocation9 + $0x4c] sm:$0xf] }
 0x3aa   :  { %2025 = vmatpush.bf16.msrb.mxu3 %v3150_v22  ;;  %2013 = vmatpush.bf16.msrb.mxu2 %v3134_v32  ;;  %v3106_v58 = vor.u32 %v3441_v47, %v3105_v45  ;;  %v3110_v59 = vor.u32 %v3440_v48, %v3107_v49  ;;  %v3071_v22 = vld [vmem:[#allocation9 + $0xc] sm:$0xf0]  ;;  %v1826_v45 = vrot.slane %v3877_v56, 2 }
 0x3ab   :  { %v1572_v55 = vadd.f32 %v1570_v50, %v1569_v51 }
 0x3ac   :  { %2002 = vmatpush.bf16.msrb.mxu1 %v3106_v58 }
 0x3ad   :  { %3536 = vtanh.f32 %v1572_v55  ;;  %v3442_v55 = vld [vmem:[#allocation9 + $0x58] sm:$0xf0] }
 0x3ae   :  { %2026 = vmatpush.bf16.msrb.mxu3 %v3138_v35  ;;  %2014 = vmatpush.bf16.msrb.mxu2 %v3122_v41 }
 0x3b2   :  { %2027 = vmatpush.bf16.msrb.mxu3 %v3126_v46  ;;  %2015 = vmatpush.bf16.msrb.mxu2 %v3110_v59 }
 0x3b3   :  { %v3537_v61 = vpop.eup %3536 }
 0x3b4   :  { %v1575_v0 = vmul.f32 %v3537_v61, %v1574_v60  ;;  %v3438_v60 = vld [vmem:[#allocation9 + $0x38] sm:$0xf0] }
 0x3b5   :  { %v3094_v63 = vor.u32 %v3438_v60, %v3093_v17  ;;  %v3251_v17 = vld [vmem:[#allocation9 + $0xa8] sm:$0xf]  ;;  %v3477_v60 = vld [vmem:[#allocation9 + $0xb0] sm:$0xf0] }
 0x3b6   :  { %v3872_v2 = vadd.f32 %v1576_v1, %v1575_v0  ;;  %v3114_v0 = vor.u32 %v3442_v55, %v3113_v52  ;;  %v3437_v1 = vld [vmem:[#allocation9 + $0x34] sm:$0xf] }
 0x3b7   :  { %2003 = vmatpush.bf16.msrb.mxu1 %v3094_v63  ;;  %v3473_v63 = vld [vmem:[#allocation9 + $0x94] sm:$0xf] }
 0x3b8   :  { %1578 = vst [vmem:[#allocation11 + $0x4] sm:$0x1] %v3872_v2  ;;  %v1581_v8 = vpack.c.bf16 %v3872_v2, %v3872_v2  ;;  %2028 = vmatpush.bf16.msrb.mxu3 %v3114_v0  ;;  %v3252_v0 = vor.u32 %v3477_v60, %v3251_v17 }
 0x3ba   :  { %1750 = vmatmul.bf16.vlgmr.msra.gmra.mxu2 %v1581_v8  ;;  %1763 = vmatmul.bf16.vlgmr.msra.gmra.mxu3 %v1581_v8 }
 0x3bb   :  { %1776 = vmatmul.bf16.vlgmr.msrb.gmra.mxu0 %v1581_v8  ;;  %v3095_v8 = vld [vmem:[#allocation9 + $0x3c] sm:$0xf0]  ;;  %2004 = vmatpush.bf16.msrb.mxu1 %v3082_v16 }
 0x3bc   :  { %v3098_v9 = vor.u32 %v3437_v1, %v3095_v8  ;;  %v3253_v1 = vld [vmem:[#allocation9 + $0xb4] sm:$0xf0]  ;;  %v3259_v8 = vld [vmem:[#allocation9 + $0xb0] sm:$0xf]  ;;  %2254 = vmatpush.bf16.msra.mxu0 %v3252_v0 }
 0x3be   :  { %2016 = vmatpush.bf16.msrb.mxu2 %v3098_v9 }
 0x3c2   :  { %2017 = vmatpush.bf16.msrb.mxu2 %v3086_v54  ;;  %v3227_v54 = vld [vmem:[#allocation9 + $0x78] sm:$0xf] }
 0x438   :  { %v3879_v7 = vpop.f32.mrf.mxu0 }
 0x439   :  { %v1824_v38 = vadd.f32 %v3863_v44, %v3879_v7 }
 0x43d   :  { %v1751_v53 = vpop.f32.mrf.mxu2  ;;  %v1764_v20 = vpop.f32.mrf.mxu3 }
 0x43e   :  { %v1781_v23 = vadd.f32 %v1751_v53, %v3877_v56  ;;  %v1804_v4 = vadd.f32 %v1802_v12, %v1764_v20  ;;  %v3102_v12 = vor.u32 %v3439_v62, %v3101_v6  ;;  %v3432_v53 = vld [vmem:[#allocation9 + $0x8] sm:$0xf0]  ;;  %v3090_v20 = vor.u32 %v3436_v15, %v3089_v13  ;;  %v3239_v62 = vld [vmem:[#allocation9 + $0x90] sm:$0xf] }
 0x43f   :  { %v3244_v13 = vor.u32 %v3473_v63, %v3241_v11  ;;  %v3187_v63 = vld [vmem:[#allocation9 + $0x20] sm:$0xf] }
 0x440   :  { %v3065_v28 = vmul.f32 -1.442695, %v1781_v23  ;;  %v3066_v24 = vmul.f32 -1.442695, %v1804_v4  ;;  %v1779_v29 = vpop.f32.mrf.mxu0  ;;  %2029 = vmatpush.bf16.msrb.mxu3 %v3102_v12  ;;  %v3077_v4 = vld [vmem:[#allocation9 + $0x8] sm:$0xf] }
 0x441   :  { %v3074_v29 = vor.u32 %v3431_v21, %v3071_v22  ;;  %v3078_v31 = vor.u32 %v3433_v25, %v3077_v4  ;;  %v3247_v12 = vld [vmem:[#allocation9 + $0x98] sm:$0xf]  ;;  %v3229_v21 = vld [vmem:[#allocation9 + $0x84] sm:$0xf0]  ;;  %v3235_v22 = vld [vmem:[#allocation9 + $0x80] sm:$0xf] }
 0x442   :  { %3538 = vpow2.f32 %v3065_v28  ;;  %v3070_v28 = vor.u32 %v3432_v53, %v3069_v18  ;;  %v3248_v15 = vor.u32 %v3475_v57, %v3247_v12  ;;  %v3471_v18 = vld [vmem:[#allocation9 + $0x80] sm:$0xf0]  ;;  %v3472_v25 = vld [vmem:[#allocation9 + $0x88] sm:$0xf0]  ;;  %v3167_v57 = vld [vmem:[#allocation9] sm:$0xf] }
 0x443   :  { %3540 = vpow2.f32 %v3066_v24  ;;  %2018 = vmatpush.bf16.msrb.mxu2 %v3074_v29  ;;  %v3228_v53 = vor.u32 %v3471_v18, %v3227_v54  ;;  %v3215_v29 = vld [vmem:[#allocation9 + $0x60] sm:$0xf]  ;;  %v3169_v54 = vld [vmem:[#allocation9 + $0xc] sm:$0xf0] }
 0x444   :  { %2030 = vmatpush.bf16.msrb.mxu3 %v3090_v20  ;;  %2005 = vmatpush.bf16.msrb.mxu1 %v3070_v28  ;;  %v3470_v20 = vld [vmem:[#allocation9 + $0x7c] sm:$0xf] }
 0x445   :  { %v1753_v50 = vpop.f32.mrf.mxu2  ;;  %v1766_v51 = vpop.f32.mrf.mxu3  ;;  %v3232_v4 = vor.u32 %v3470_v20, %v3229_v21  ;;  %v3457_v20 = vld [vmem:[#allocation9 + $0x10] sm:$0xf0] }
 0x448   :  { %v3539_v61 = vpop.eup %3538  ;;  %2031 = vmatpush.bf16.msrb.mxu3 %v3078_v31  ;;  %v3467_v31 = vld [vmem:[#allocation9 + $0x64] sm:$0xf] }
 0x449   :  { %v3541_v3 = vpop.eup %3540  ;;  %v1785_v5 = vadd.f32 1.0, %v3539_v61  ;;  %v3476_v61 = vld [vmem:[#allocation9 + $0xac] sm:$0xf] }
 0x44a   :  { %v3883_v19 = vadd.f32 1.0, %v3541_v3  ;;  %v3478_v3 = vld [vmem:[#allocation9 + $0xb8] sm:$0xf0] }
 0x44b   :  { %3542 = vrcp.f32 %v1785_v5  ;;  %v1797_v32 = vand.u32 2147483648, %v1785_v5  ;;  %v1795_v40 = vand.u32 2147483647, %v1785_v5  ;;  %vm1791_vm9 = vweird.f32 %v1785_v5 }
 0x44c   :  { %3544 = vrcp.f32 %v3883_v19  ;;  %v1820_v46 = vand.u32 2147483648, %v3883_v19  ;;  %vm1814_vm13 = vweird.f32 %v3883_v19  ;;  %v1818_v47 = vand.u32 2147483647, %v3883_v19 }
 0x44d   :  { %v1798_v37 = vor.u32 1.1754944e-38, %v1797_v32  ;;  %vm1796_vm11 = vcmp.eq.f32.partialorder %v1795_v40, 8.507059e+37  ;;  %v3260_v6 = vor.u32 %v3478_v3, %v3259_v8  ;;  %v3223_v40 = vld [vmem:[#allocation9 + $0x68] sm:$0xf]  ;;  %v3179_v8 = vld [vmem:[#allocation9 + $0x18] sm:$0xf] }
 0x44e   :  { %v1821_v50 = vor.u32 1.1754944e-38, %v1820_v46  ;;  %vm1819_vm15 = vcmp.eq.f32.partialorder %v1818_v47, 8.507059e+37  ;;  %v3205_v46 = vld [vmem:[#allocation9 + $0x54] sm:$0xf0]  ;;  %v3211_v47 = vld [vmem:[#allocation9 + $0x50] sm:$0xf] }
 0x44f   :  { %2280 = vmatpush.bf16.msra.mxu2 %v3260_v6  ;;  %v3459_v3 = vld [vmem:[#allocation9 + $0x20] sm:$0xf0]  ;;  %v3458_v6 = vld [vmem:[#allocation9 + $0x1c] sm:$0xf] }
 0x450   :  { %v3180_v11 = vor.u32 %v3459_v3, %v3179_v8 }
 0x451   :  { %v3543_v23 = vpop.eup %3542 }
 0x452   :  { %v3545_v26 = vpop.eup %3544  ;;  %v1787_v27 = vmul.f32 %v3543_v23, %v1785_v5  ;;  %vm1792_vm8 = vweird.f32 %v3543_v23  ;;  %v3256_v5 = vor.u32 %v3476_v61, %v3253_v1  ;;  %v3463_v61 = vld [vmem:[#allocation9 + $0x40] sm:$0xf0] }
 0x453   :  { %v1810_v24 = vmul.f32 %v3545_v26, %v3883_v19  ;;  %vm1793_vm10 = vmor %vm1791_vm9, %vm1792_vm8  ;;  %vm1815_vm12 = vweird.f32 %v3545_v26  ;;  %v3474_v19 = vld [vmem:[#allocation9 + $0x98] sm:$0xf0]  ;;  %2281 = vmatpush.bf16.msra.mxu2 %v3248_v15 }
 0x454   :  { %v1788_v30 = vsub.f32 1.0, %v1787_v27  ;;  %vm1816_vm14 = vmor %vm1814_vm13, %vm1815_vm12  ;;  %2267 = vmatpush.bf16.msra.mxu1 %v3256_v5  ;;  %v3240_v10 = vor.u32 %v3474_v19, %v3239_v62  ;;  %v3236_v27 = vor.u32 %v3472_v25, %v3235_v22  ;;  %v3181_v62 = vld [vmem:[#allocation9 + $0x24] sm:$0xf0] }
 0x455   :  { %v1811_v33 = vsub.f32 1.0, %v1810_v24  ;;  %v3184_v12 = vor.u32 %v3458_v6, %v3181_v62 }
 0x456   :  { %v1789_v34 = vmul.f32 %v3543_v23, %v1788_v30  ;;  %2255 = vmatpush.bf16.msra.mxu0 %v3240_v10  ;;  %v3468_v30 = vld [vmem:[#allocation9 + $0x68] sm:$0xf0] }
 0x457   :  { %v1812_v35 = vmul.f32 %v3545_v26, %v1811_v33  ;;  %2282 = vmatpush.bf16.msra.mxu2 %v3236_v27  ;;  %v3216_v33 = vor.u32 %v3468_v30, %v3215_v29 }
 0x458   :  { %v1790_v36 = vadd.f32 %v3543_v23, %v1789_v34  ;;  %2268 = vmatpush.bf16.msra.mxu1 %v3244_v13  ;;  %v3217_v34 = vld [vmem:[#allocation9 + $0x6c] sm:$0xf0] }
 0x459   :  { %v1813_v42 = vadd.f32 %v3545_v26, %v1812_v35  ;;  %v3469_v35 = vld [vmem:[#allocation9 + $0x70] sm:$0xf0] }
 0x45a   :  { %v1794_v39 = vsel %vm1793_vm10, %v3543_v23, %v1790_v36  ;;  %2256 = vmatpush.bf16.msra.mxu0 %v3228_v53  ;;  %v3175_v53 = vld [vmem:[#allocation9 + $0x8] sm:$0xf] }
 0x45b   :  { %v1799_v41 = vsel %vm1796_vm11, %v1798_v37, %v1794_v39  ;;  %v1817_v49 = vsel %vm1816_vm14, %v3545_v26, %v1813_v42  ;;  %v3220_v37 = vor.u32 %v3467_v31, %v3217_v34  ;;  %v3203_v39 = vld [vmem:[#allocation9 + $0x48] sm:$0xf]  ;;  %v3464_v42 = vld [vmem:[#allocation9 + $0x4c] sm:$0xf]  ;;  %v3176_v25 = vor.u32 %v3457_v20, %v3175_v53 }
 0x45c   :  { %v1825_v43 = vmul.f32 %v1824_v38, %v1799_v41  ;;  %v1822_v7 = vsel %vm1819_vm15, %v1821_v50, %v1817_v49  ;;  %2269 = vmatpush.bf16.msra.mxu1 %v3232_v4  ;;  %v3224_v38 = vor.u32 %v3469_v35, %v3223_v40  ;;  %v3465_v41 = vld [vmem:[#allocation9 + $0x50] sm:$0xf0]  ;;  %v3208_v50 = vor.u32 %v3464_v42, %v3205_v46 }
 0x45d   :  { %v1830_v51 = vsub.f32 1.0, %v1822_v7  ;;  %v1832_v58 = vmul.f32 %v1822_v7, %v3872_v2  ;;  %v3899_v2 = vld [vmem:[#allocation2 + $0x6] ss:$8 sm:$0x7] }
 0x45e   :  { %v1828_v48 = vadd.f32 %v1826_v45, %v1825_v43  ;;  %v2058_v23 = vrot.slane %v3899_v2, 1  ;;  %2257 = vmatpush.bf16.msra.mxu0 %v3216_v33  ;;  %v3204_v45 = vor.u32 %v3465_v41, %v3203_v39  ;;  %2283 = vmatpush.bf16.msra.mxu2 %v3224_v38  ;;  %v2082_v40 = vrot.slane %v3899_v2, 2 }
 0x460   :  { %3546 = vtanh.f32 %v1828_v48  ;;  %2270 = vmatpush.bf16.msra.mxu1 %v3220_v37  ;;  %v3466_v48 = vld [vmem:[#allocation9 + $0x58] sm:$0xf0] }
 0x461   :  { %v3212_v7 = vor.u32 %v3466_v48, %v3211_v47 }
 0x462   :  { %2258 = vmatpush.bf16.msra.mxu0 %v3204_v45 }
 0x463   :  { %2284 = vmatpush.bf16.msra.mxu2 %v3212_v7  ;;  %v2092_v7 = vld [vmem:[#allocation2 + $0x7] ss:$8 sm:$0x7] }
 0x464   :  { %2271 = vmatpush.bf16.msra.mxu1 %v3208_v50 }
 0x466   :  { %v3547_v52 = vpop.eup %3546 }
 0x467   :  { %v1831_v55 = vmul.f32 %v3547_v52, %v1830_v51  ;;  %v3191_v51 = vld [vmem:[#allocation9 + $0x30] sm:$0xf]  ;;  %v3462_v52 = vld [vmem:[#allocation9 + $0x38] sm:$0xf0] }
 0x468   :  { %v3192_v60 = vor.u32 %v3462_v52, %v3191_v51  ;;  %v2314_v51 = vrot.slane %v2092_v7, 1 }
 0x469   :  { %v3894_v59 = vadd.f32 %v1832_v58, %v1831_v55  ;;  %v3461_v55 = vld [vmem:[#allocation9 + $0x34] sm:$0xf]  ;;  %v3193_v58 = vld [vmem:[#allocation9 + $0x3c] sm:$0xf0] }
 0x46a   :  { %v3196_v1 = vor.u32 %v3461_v55, %v3193_v58  ;;  %2259 = vmatpush.bf16.msra.mxu0 %v3192_v60 }
 0x46b   :  { %1834 = vst [vmem:[#allocation11 + $0x5] sm:$0x1] %v3894_v59  ;;  %v1837_v56 = vpack.c.bf16 %v3894_v59, %v3894_v59 }
 0x46c   :  { %2272 = vmatpush.bf16.msra.mxu1 %v3196_v1 }
 0x46d   :  { %2006 = vmatmul.bf16.vlgmr.msrb.gmra.mxu1 %v1837_v56  ;;  %2019 = vmatmul.bf16.vlgmr.msrb.gmra.mxu2 %v1837_v56 }
 0x46e   :  { %2032 = vmatmul.bf16.vlgmr.msrb.gmra.mxu3 %v1837_v56  ;;  %v3199_v56 = vld [vmem:[#allocation9 + $0x38] sm:$0xf]  ;;  %2260 = vmatpush.bf16.msra.mxu0 %v3180_v11 }
 0x46f   :  { %v3200_v5 = vor.u32 %v3463_v61, %v3199_v56 }
 0x470   :  { %2273 = vmatpush.bf16.msra.mxu1 %v3184_v12 }
 0x471   :  { %2285 = vmatpush.bf16.msra.mxu2 %v3200_v5 }
 0x4ea   :  { %v2007_v9 = vpop.f32.mrf.mxu1 }
 0x4eb   :  { %v2037_v14 = vadd.f32 %v2007_v9, %v3899_v2  ;;  %v3460_v9 = vld [vmem:[#allocation9 + $0x28] sm:$0xf0] }
 0x4ec   :  { %v3188_v15 = vor.u32 %v3460_v9, %v3187_v63 }
 0x4ed   :  { %v3163_v16 = vmul.f32 -1.442695, %v2037_v14  ;;  %v3456_v14 = vld [vmem:[#allocation9 + $0x8] sm:$0xf0] }
 0x4ee   :  { %v3168_v21 = vor.u32 %v3456_v14, %v3167_v57  ;;  %2286 = vmatpush.bf16.msra.mxu2 %v3188_v15 }
 0x4ef   :  { %3548 = vpow2.f32 %v3163_v16  ;;  %v3455_v16 = vld [vmem:[#allocation9 + $0x4] sm:$0xf] }
 0x4f0   :  { %v2020_v26 = vpop.f32.mrf.mxu2  ;;  %2261 = vmatpush.bf16.msra.mxu0 %v3168_v21  ;;  %v2338_v21 = vrot.slane %v2092_v7, 2 }
 0x4f1   :  { %v2060_v28 = vadd.f32 %v2058_v23, %v2020_v26  ;;  %v3903_v24 = vpop.f32.mrf.mxu3  ;;  %v3172_v23 = vor.u32 %v3455_v16, %v3169_v54 }
 0x4f2   :  { %v2009_v32 = vpop.f32.mrf.mxu1  ;;  %2287 = vmatpush.bf16.msra.mxu2 %v3176_v25  ;;  %v2080_v34 = vadd.f32 %v3863_v44, %v3903_v24 }
 0x4f3   :  { %v3164_v36 = vmul.f32 -1.442695, %v2060_v28  ;;  %2274 = vmatpush.bf16.msra.mxu1 %v3172_v23 }
 0x4f5   :  { %v3549_v43 = vpop.eup %3548  ;;  %3550 = vpow2.f32 %v3164_v36 }
 0x4f6   :  { %v3905_v49 = vadd.f32 1.0, %v3549_v43 }
 0x4f8   :  { %3552 = vrcp.f32 %v3905_v49  ;;  %v2022_v17 = vpop.f32.mrf.mxu2  ;;  %v2053_v4 = vand.u32 2147483648, %v3905_v49  ;;  %v2051_v27 = vand.u32 2147483647, %v3905_v49  ;;  %vm2047_vm1 = vweird.f32 %v3905_v49 }
 0x4f9   :  { %v2035_v0 = vpop.f32.mrf.mxu3 }
 0x4fa   :  { %v2054_v31 = vor.u32 1.1754944e-38, %v2053_v4  ;;  %vm2052_vm3 = vcmp.eq.f32.partialorder %v2051_v27, 8.507059e+37 }
 0x4fb   :  { %v3551_v19 = vpop.eup %3550 }
 0x4fc   :  { %v2064_v10 = vadd.f32 1.0, %v3551_v19 }
 0x4fe   :  { %v3553_v13 = vpop.eup %3552  ;;  %3554 = vrcp.f32 %v2064_v10  ;;  %v2076_v37 = vand.u32 2147483648, %v2064_v10  ;;  %v2074_v39 = vand.u32 2147483647, %v2064_v10  ;;  %vm2070_vm5 = vweird.f32 %v2064_v10 }
 0x4ff   :  { %v2043_v18 = vmul.f32 %v3553_v13, %v3905_v49  ;;  %vm2048_vm0 = vweird.f32 %v3553_v13 }
 0x500   :  { %vm2049_vm2 = vmor %vm2047_vm1, %vm2048_vm0  ;;  %v2077_v43 = vor.u32 1.1754944e-38, %v2076_v37  ;;  %vm2075_vm7 = vcmp.eq.f32.partialorder %v2074_v39, 8.507059e+37 }
 0x501   :  { %v2044_v22 = vsub.f32 1.0, %v2043_v18 }
 0x503   :  { %v2045_v26 = vmul.f32 %v3553_v13, %v2044_v22 }
 0x504   :  { %v3555_v28 = vpop.eup %3554 }
 0x505   :  { %v2066_v29 = vmul.f32 %v3555_v28, %v2064_v10  ;;  %v2046_v30 = vadd.f32 %v3553_v13, %v2045_v26  ;;  %vm2071_vm4 = vweird.f32 %v3555_v28 }
 0x506   :  { %vm2072_vm6 = vmor %vm2070_vm5, %vm2071_vm4 }
 0x507   :  { %v2067_v32 = vsub.f32 1.0, %v2066_v29  ;;  %v2050_v33 = vsel %vm2049_vm2, %v3553_v13, %v2046_v30 }
 0x508   :  { %v2055_v35 = vsel %vm2052_vm3, %v2054_v31, %v2050_v33 }
 0x509   :  { %v2068_v36 = vmul.f32 %v3555_v28, %v2067_v32  ;;  %v2081_v38 = vmul.f32 %v2080_v34, %v2055_v35 }
 0x50b   :  { %v2069_v41 = vadd.f32 %v3555_v28, %v2068_v36  ;;  %v2084_v42 = vadd.f32 %v2082_v40, %v2081_v38 }
 0x50d   :  { %v2073_v45 = vsel %vm2072_vm6, %v3555_v28, %v2069_v41  ;;  %3556 = vtanh.f32 %v2084_v42 }
 0x50e   :  { %v2078_v46 = vsel %vm2075_vm7, %v2077_v43, %v2073_v45 }
 0x50f   :  { %v2086_v47 = vsub.f32 1.0, %v2078_v46  ;;  %v2088_v2 = vmul.f32 %v2078_v46, %v3894_v59 }
 0x513   :  { %v3557_v48 = vpop.eup %3556 }
 0x514   :  { %v2087_v24 = vmul.f32 %v3557_v48, %v2086_v47 }
 0x516   :  { %v3916_v49 = vadd.f32 %v2088_v2, %v2087_v24 }
 0x518   :  { %2090 = vst [vmem:[#allocation11 + $0x6] sm:$0x1] %v3916_v49  ;;  %v2093_v50 = vpack.c.bf16 %v3916_v49, %v3916_v49 }
 0x51a   :  { %2262 = vmatmul.bf16.vlgmr.msra.gmra.mxu0 %v2093_v50  ;;  %2275 = vmatmul.bf16.vlgmr.msra.gmra.mxu1 %v2093_v50 }
 0x51b   :  { %2288 = vmatmul.bf16.vlgmr.msra.gmra.mxu2 %v2093_v50 }
 0x597   :  { %v2263_v52 = vpop.f32.mrf.mxu0  ;;  %v2276_v55 = vpop.f32.mrf.mxu1 }
 0x598   :  { %v2293_v58 = vadd.f32 %v2263_v52, %v2092_v7  ;;  %v2316_v56 = vadd.f32 %v2314_v51, %v2276_v55 }
 0x59a   :  { %v3261_v17 = vmul.f32 -1.442695, %v2293_v58  ;;  %v3262_v60 = vmul.f32 -1.442695, %v2316_v56 }
 0x59c   :  { %3558 = vpow2.f32 %v3261_v17 }
 0x59d   :  { %3560 = vpow2.f32 %v3262_v60 }
 0x59e   :  { %v2289_v59 = vpop.f32.mrf.mxu2 }
 0x59f   :  { %v2265_v61 = vpop.f32.mrf.mxu0  ;;  %v2278_v0 = vpop.f32.mrf.mxu1  ;;  %v2336_v18 = vadd.f32 %v3863_v44, %v2289_v59 }
 0x5a2   :  { %v3559_v1 = vpop.eup %3558 }
 0x5a3   :  { %v3561_v8 = vpop.eup %3560  ;;  %v2297_v3 = vadd.f32 1.0, %v3559_v1 }
 0x5a4   :  { %v2320_v5 = vadd.f32 1.0, %v3561_v8 }
 0x5a5   :  { %3562 = vrcp.f32 %v2297_v3  ;;  %v2309_v12 = vand.u32 2147483648, %v2297_v3  ;;  %v2307_v14 = vand.u32 2147483647, %v2297_v3  ;;  %vm2303_vm9 = vweird.f32 %v2297_v3 }
 0x5a6   :  { %3564 = vrcp.f32 %v2320_v5  ;;  %v2291_v6 = vpop.f32.mrf.mxu2  ;;  %v2332_v22 = vand.u32 2147483648, %v2320_v5  ;;  %vm2326_vm13 = vweird.f32 %v2320_v5  ;;  %v2330_v4 = vand.u32 2147483647, %v2320_v5 }
 0x5a7   :  { %v2310_v16 = vor.u32 1.1754944e-38, %v2309_v12  ;;  %vm2308_vm11 = vcmp.eq.f32.partialorder %v2307_v14, 8.507059e+37 }
 0x5a8   :  { %v2333_v27 = vor.u32 1.1754944e-38, %v2332_v22  ;;  %vm2331_vm15 = vcmp.eq.f32.partialorder %v2330_v4, 8.507059e+37 }
 0x5ab   :  { %v3563_v62 = vpop.eup %3562 }
 0x5ac   :  { %v3565_v19 = vpop.eup %3564  ;;  %v2299_v63 = vmul.f32 %v3563_v62, %v2297_v3  ;;  %vm2304_vm8 = vweird.f32 %v3563_v62 }
 0x5ad   :  { %v2322_v9 = vmul.f32 %v3565_v19, %v2320_v5  ;;  %vm2305_vm10 = vmor %vm2303_vm9, %vm2304_vm8  ;;  %vm2327_vm12 = vweird.f32 %v3565_v19 }
 0x5ae   :  { %v2300_v10 = vsub.f32 1.0, %v2299_v63  ;;  %vm2328_vm14 = vmor %vm2326_vm13, %vm2327_vm12 }
 0x5af   :  { %v2323_v11 = vsub.f32 1.0, %v2322_v9 }
 0x5b0   :  { %v2301_v57 = vmul.f32 %v3563_v62, %v2300_v10 }
 0x5b1   :  { %v2324_v13 = vmul.f32 %v3565_v19, %v2323_v11 }
 0x5b2   :  { %v2302_v15 = vadd.f32 %v3563_v62, %v2301_v57 }
 0x5b3   :  { %v2325_v53 = vadd.f32 %v3565_v19, %v2324_v13 }
 0x5b4   :  { %v2306_v54 = vsel %vm2305_vm10, %v3563_v62, %v2302_v15 }
 0x5b5   :  { %v2311_v20 = vsel %vm2308_vm11, %v2310_v16, %v2306_v54  ;;  %v2329_v26 = vsel %vm2328_vm14, %v3565_v19, %v2325_v53 }
 0x5b6   :  { %v2337_v23 = vmul.f32 %v2336_v18, %v2311_v20  ;;  %v2334_v28 = vsel %vm2331_vm15, %v2333_v27, %v2329_v26 }
 0x5b7   :  { %v2342_v29 = vsub.f32 1.0, %v2334_v28  ;;  %v2344_v31 = vmul.f32 %v2334_v28, %v3916_v49 }
 0x5b8   :  { %v2340_v25 = vadd.f32 %v2338_v21, %v2337_v23 }
 0x5ba   :  { %3566 = vtanh.f32 %v2340_v25 }
 0x5c0   :  { %v3567_v30 = vpop.eup %3566 }
 0x5c1   :  { %v2343_v44 = vmul.f32 %v3567_v30, %v2342_v29 }
 0x5c3   :  { %v2345_v32 = vadd.f32 %v2344_v31, %v2343_v44 }
 0x5c5   :  { %2346 = vst [vmem:[#allocation11 + $0x7] sm:$0x1] %v2345_v32 }
 0x5c6   :  { %2347 = vst [vmem:[#allocation12] sm:$0x1] %v2345_v32  ;;  %2358 = dma.vmem_to_hbm [thread:$0]  %s2354_s24, 128, %s2356_s27, [#allocation5]  }
 0x5c7   :  { %2369 = dma.vmem_to_hbm [thread:$0]  %s2365_s29, 16, %s2367_s9, [#allocation13]  }
 0x5c8   :  { %3719 = dma.done.wait [#allocation5], 128  }
 0x5c9   :  { %3720 = vsyncadd [#allocation5], 4294967168 }
 0x5ca   :  { %3721 = dma.done.wait [#allocation13], 16  }
 0x5cb   :  { %3722 = vsyncadd [#allocation13], 4294967280 }
 0x5cc   :  { %2378 = vsyncpa [#allocation4], 1 }
 0x5cd   :  { %2379 = vsyncpa [#allocation7], 1 }
 0x5ce   :  { %2380 = vsyncpa [#allocation10], 1 }
 0x5cf   :  { %2381 = vsyncpa [#allocation5], 1 }
 0x5d0   :  { %2382 = vsyncpa [#allocation13], 1 }

</bundles_post_ra>
